<compile_context>
chip_gen: v6e
topology: v6e:2x2x1
jax: 0.10.0
libtpu: 0.0.40
codegen_flags: <defaults>
</compile_context>

<pallas_src>
import jax
import jax.numpy as jnp
from jax import lax
from jax.experimental import pallas as pl
from jax.experimental.pallas import tpu as pltpu


def _bilinear_pool_ch_kernel(x_ref, gfold_ref, gbias_ref, fc_ref, out_ref):
    # x block: (TB, C_out, 4, N) float32.
    x = x_ref[...]

    # AdaptiveAvgPool1d over channels == exact mean of 4 consecutive channels:
    # a cheap sublane reduce (no MXU, no pooling matrix, no broadcast).
    xr = jnp.sum(x, axis=2) * 0.25                              # (TB, C_out, N)

    # Center over the (full, unpadded) spatial axis.
    n = xr.shape[2]
    xr = xr - jnp.sum(xr, axis=2, keepdims=True) * (1.0 / float(n))

    # Un-normalized covariance, contracting the lane (N) axis of both operands
    # directly (no transpose / XLU relayout): (TB, C_out, C_out).
    cov = lax.dot_general(
        xr, xr,
        dimension_numbers=(((2,), (2,)), ((0,), (0,))),
        preferred_element_type=jnp.float32)

    # Grouped (C_out, 1) conv with eval-mode BatchNorm and the 1/(C_out-1)
    # normalization folded into the weights, then ReLU:
    #   z[t, c] = relu(sum_k gfold[c, k] * cov[t, c, k] + gbias[c]).
    z = jnp.sum(gfold_ref[...][None, :, :] * cov, axis=2) + gbias_ref[...]
    z = jnp.maximum(z, 0.0)                                     # (TB, C_out)

    # 1x1 conv C_out -> C, contracting C_out against the weight's dim 1
    # (no weight transpose): (TB, C_out) x (C, C_out) -> (TB, C).
    out = lax.dot_general(
        z, fc_ref[...],
        dimension_numbers=(((1,), (1,)), ((), ())),
        preferred_element_type=jnp.float32)
    out_ref[...] = out.astype(out_ref.dtype)                    # one (TB, C) store


def _choose_batch_tile(B, vmem_bytes_per_sample, x_budget_bytes=8 * 1024 * 1024):
    """Pick the per-grid-step batch tile TB.

    Constraints / preferences (perf feedback):
      * output block (TB, C) needs TB % 8 == 0 or TB == B,
      * the double-buffered x block (2 * TB * vmem_bytes_per_sample) should
        stay inside a conservative budget (v7x: 64 MiB physical VMEM),
      * prefer >= 4 grid steps (2 TensorCores on v7x x >= 2 steps each for
        DMA/compute overlap), then >= 2 steps, then the largest fitting tile.
    """
    cap = max(1, x_budget_bytes // (2 * vmem_bytes_per_sample))
    tiles = [t for t in range(8, B + 1, 8) if B % t == 0]
    if B not in tiles:
        tiles.append(B)                       # TB == B is always a legal block
    fitting = [t for t in tiles if t <= cap]
    if not fitting:
        # Even the smallest legal tile busts the budget; the wrapper raises
        # vmem_limit_bytes to cover it instead of silently overflowing.
        return min(tiles)
    for min_steps in (4, 2):
        good = [t for t in fitting if B // t >= min_steps]
        if good:
            return max(good)
    return max(fitting)


def bilinear_pooling_ch(x, gconv_w, fc_w, bn_gamma, bn_beta, bn_mean, bn_var,
                        eps=1e-5):
    """Forward of BilinearPooling_ch. x: [B, C, H, W] f32 -> [B, C, 1, 1] f32."""
    B, C, H, W = x.shape
    C_out = C // 4
    assert C % 4 == 0 and C_out >= 2, (
        "BilinearPooling_ch requires C % 4 == 0 and C >= 8 "
        "(the module divides by C_out - 1).")

    N = H * W
    # Free (contiguous) reshape: channel c = 4*g + r  ->  (B, C_out, 4, N).
    # No spatial padding: the BlockSpec carries the full (C_out, 4, N) extents.
    x_g = x.reshape(B, C_out, 4, N).astype(jnp.float32)

    # Fold eval-mode BatchNorm2d and the 1/(C_out-1) normalization into the
    # grouped-conv weights (exact algebraic identity).
    bn_scale = bn_gamma / jnp.sqrt(bn_var + eps)                   # (C_out,)
    bn_shift = bn_beta - bn_mean * bn_scale                        # (C_out,)
    g_fold = gconv_w * (bn_scale / float(C_out - 1))[:, None]      # (C_out, C_out)
    g_bias = (jnp.sum(gconv_w, axis=1) * bn_shift)[None, :]        # (1, C_out)

    # VMEM footprint of one sample's x block: the size-4 sublane dim pads to 8.
    per_sample_vmem = C_out * 8 * N * x_g.dtype.itemsize
    TB = _choose_batch_tile(B, per_sample_vmem)
    block_bytes = TB * per_sample_vmem
    # Cover the double-buffered x block (+ small weights/outputs); never below
    # the 32 MiB default.  Clamped at 128 MiB (v5e/v6e physical VMEM).
    vmem_limit = int(min(128 * 1024 * 1024,
                         max(32 * 1024 * 1024,
                             2 * block_bytes + 4 * 1024 * 1024)))

    out = pl.pallas_call(
        _bilinear_pool_ch_kernel,
        out_shape=jax.ShapeDtypeStruct((B, C), jnp.float32),
        grid_spec=pltpu.PrefetchScalarGridSpec(
            num_scalar_prefetch=0,
            grid=(B // TB,),
            in_specs=[
                pl.BlockSpec((TB, C_out, 4, N), lambda b: (b, 0, 0, 0)),  # x
                pl.BlockSpec((C_out, C_out), lambda b: (0, 0)),   # folded grouped conv
                pl.BlockSpec((1, C_out), lambda b: (0, 0)),       # folded bias
                pl.BlockSpec((C, C_out), lambda b: (0, 0)),       # 1x1 conv weight
            ],
            out_specs=pl.BlockSpec((TB, C), lambda b: (b, 0)),
        ),
        compiler_params=pltpu.CompilerParams(
            dimension_semantics=("parallel",),
            vmem_limit_bytes=vmem_limit),
    )(x_g, g_fold, g_bias, fc_w)

    return out.reshape(B, C, 1, 1)


def reference_forward(x, gconv_w, fc_w, bn_gamma, bn_beta, bn_mean, bn_var,
                      eps=1e-5):
    """Pure-JAX reference mirroring the PyTorch forward (eval-mode BN)."""
    B, C, H, W = x.shape
    C_out = C // 4
    xf = x.reshape(B, C, H * W).astype(jnp.float32)
    xr = xf.reshape(B, C_out, 4, H * W).mean(axis=2)        # AdaptiveAvgPool1d over C
    xr = xr - xr.mean(axis=2, keepdims=True)
    cov = jnp.einsum('bon,bpn->bop', xr, xr) / float(C_out - 1)
    scale = bn_gamma / jnp.sqrt(bn_var + eps)
    y = (cov - bn_mean[None, :, None]) * scale[None, :, None] + bn_beta[None, :, None]
    z = jnp.maximum(jnp.einsum('ck,bck->bc', gconv_w, y), 0.0)
    out = jnp.einsum('oc,bc->bo', fc_w, z)
    return out.reshape(B, C, 1, 1)


if __name__ == "__main__":
    # channel=16 -> C_out=4; batch=16 so the batched grid path (TB=8, 2 steps)
    # is exercised end-to-end.
    B, C, H, W = 16, 16, 16, 16
    C_out = C // 4
    eps = 1e-5

    key = jax.random.PRNGKey(0)
    kx, kg, kf, kgam, kbet, kmu, kvar = jax.random.split(key, 7)

    x = jax.random.normal(kx, (B, C, H, W), dtype=jnp.float32)

    # BatchNorm2d(C_out) parameters (deterministic, eval-mode running stats).
    gamma = 1.0 + 0.1 * jax.random.normal(kgam, (C_out,), dtype=jnp.float32)
    beta = 0.1 * jax.random.normal(kbet, (C_out,), dtype=jnp.float32)
    running_mean = 0.05 * jax.random.normal(kmu, (C_out,), dtype=jnp.float32)
    running_var = 1.0 + 0.1 * jax.random.uniform(kvar, (C_out,), dtype=jnp.float32)

    # row_conv_group_for_channel: Conv2d(C_out, C_out, (C_out,1), groups=C_out,
    # bias=False) -> weight [C_out, 1, C_out, 1] squeezed to (C_out, C_out).
    gconv_w = 0.1 * jax.random.normal(kg, (C_out, C_out), dtype=jnp.float32)

    # fc_adapt_channels_for_channel: Conv2d(C_out, C, 1, bias=False)
    # -> weight [C, C_out, 1, 1] squeezed to (C, C_out).
    fc_w = 0.1 * jax.random.normal(kf, (C, C_out), dtype=jnp.float32)

    out = bilinear_pooling_ch(x, gconv_w, fc_w, gamma, beta,
                              running_mean, running_var, eps)
    out = jax.block_until_ready(out)

    ref = reference_forward(x, gconv_w, fc_w, gamma, beta,
                            running_mean, running_var, eps)
    assert out.shape == (B, C, 1, 1)
    assert jnp.allclose(out, ref, rtol=1e-3, atol=1e-3), "mismatch vs reference"

    print("KERNEL_OK")
</pallas_src>

<mosaic_0001>
module attributes {stable_mosaic.version = 11 : i64} {
  func.func @_bilinear_pool_ch_kernel(%arg0: i32, %arg1: memref<8x4x4x256xf32, #tpu.memory_space<vmem>>, %arg2: memref<4x4xf32, #tpu.memory_space<vmem>>, %arg3: memref<1x4xf32, #tpu.memory_space<vmem>>, %arg4: memref<16x4xf32, #tpu.memory_space<vmem>>, %arg5: memref<8x16xf32, #tpu.memory_space<vmem>>) attributes {dimension_semantics = [#tpu.dimension_semantics<parallel>], iteration_bounds = array<i64: 2>, scalar_prefetch = 0 : i64, scratch_operands = 0 : i64, tpu.core_type = #tpu.core_type<tc>, window_params = [{transform_indices = @transform_0, window_bounds = array<i64: 8, 4, 4, 256>}, {pipeline_mode = #tpu.pipeline_mode<synchronous>, transform_indices = @transform_1, window_bounds = array<i64: 4, 4>}, {pipeline_mode = #tpu.pipeline_mode<synchronous>, transform_indices = @transform_2, window_bounds = array<i64: 1, 4>}, {pipeline_mode = #tpu.pipeline_mode<synchronous>, transform_indices = @transform_3, window_bounds = array<i64: 16, 4>}, {transform_indices = @transform_4, window_bounds = array<i64: 8, 16>}]} {
    %c0 = arith.constant 0 : index
    %c0_0 = arith.constant 0 : index
    %c0_1 = arith.constant 0 : index
    %c0_2 = arith.constant 0 : index
    %0 = vector.load %arg1[%c0, %c0_0, %c0_1, %c0_2] : memref<8x4x4x256xf32, #tpu.memory_space<vmem>>, vector<8x4x4x256xf32>
    %cst = arith.constant dense<0.000000e+00> : vector<8x4x256xf32>
    %1 = vector.multi_reduction <add>, %0, %cst [2] : vector<8x4x4x256xf32> to vector<8x4x256xf32>
    %cst_3 = arith.constant 2.500000e-01 : f32
    %2 = vector.broadcast %cst_3 : f32 to vector<8x4x256xf32>
    %3 = arith.mulf %1, %2 : vector<8x4x256xf32>
    %cst_4 = arith.constant dense<0.000000e+00> : vector<8x4xf32>
    %4 = vector.multi_reduction <add>, %3, %cst_4 [2] : vector<8x4x256xf32> to vector<8x4xf32>
    %5 = vector.shape_cast %4 : vector<8x4xf32> to vector<8x4x1xf32>
    %cst_5 = arith.constant 3.906250e-03 : f32
    %6 = vector.broadcast %cst_5 : f32 to vector<8x4x1xf32>
    %7 = arith.mulf %5, %6 : vector<8x4x1xf32>
    %8 = vector.broadcast %7 : vector<8x4x1xf32> to vector<8x4x256xf32>
    %9 = arith.subf %3, %8 : vector<8x4x256xf32>
    %cst_6 = arith.constant dense<0.000000e+00> : vector<8x4x4xf32>
    %10 = tpu.matmul %9, %9, %cst_6 {dimension_numbers = #tpu.dot_dimension_numbers<[2], [2], [1], [1], [0, 0, 0, 1, 1, 1], [0], [0]>} : vector<8x4x256xf32>, vector<8x4x256xf32>, vector<8x4x4xf32> -> vector<8x4x4xf32>
    %c0_7 = arith.constant 0 : index
    %c0_8 = arith.constant 0 : index
    %11 = vector.load %arg2[%c0_7, %c0_8] : memref<4x4xf32, #tpu.memory_space<vmem>>, vector<4x4xf32>
    %12 = vector.shape_cast %11 : vector<4x4xf32> to vector<1x4x4xf32>
    %13 = vector.broadcast %12 : vector<1x4x4xf32> to vector<8x4x4xf32>
    %14 = arith.mulf %13, %10 : vector<8x4x4xf32>
    %cst_9 = arith.constant dense<0.000000e+00> : vector<8x4xf32>
    %15 = vector.multi_reduction <add>, %14, %cst_9 [2] : vector<8x4x4xf32> to vector<8x4xf32>
    %c0_10 = arith.constant 0 : index
    %c0_11 = arith.constant 0 : index
    %16 = vector.load %arg3[%c0_10, %c0_11] : memref<1x4xf32, #tpu.memory_space<vmem>>, vector<1x4xf32>
    %17 = vector.broadcast %16 : vector<1x4xf32> to vector<8x4xf32>
    %18 = arith.addf %15, %17 : vector<8x4xf32>
    %cst_12 = arith.constant 0.000000e+00 : f32
    %19 = vector.broadcast %cst_12 : f32 to vector<8x4xf32>
    %20 = arith.maximumf %18, %19 : vector<8x4xf32>
    %c0_13 = arith.constant 0 : index
    %c0_14 = arith.constant 0 : index
    %21 = vector.load %arg4[%c0_13, %c0_14] : memref<16x4xf32, #tpu.memory_space<vmem>>, vector<16x4xf32>
    %cst_15 = arith.constant dense<0.000000e+00> : vector<8x16xf32>
    %22 = tpu.matmul %20, %21, %cst_15 {dimension_numbers = #tpu.dot_dimension_numbers<[1], [1], [0], [0], [0, 0, 1, 0], [], []>} : vector<8x4xf32>, vector<16x4xf32>, vector<8x16xf32> -> vector<8x16xf32>
    %c0_16 = arith.constant 0 : index
    %c0_17 = arith.constant 0 : index
    %23 = vector.load %arg5[%c0_16, %c0_17] : memref<8x16xf32, #tpu.memory_space<vmem>>, vector<8x16xf32>
    tpu.vector_store %arg5[%c0_16, %c0_17], %22 {strides = array<i32>} : memref<8x16xf32, #tpu.memory_space<vmem>>, vector<8x16xf32>,
    return
  }
  func.func @transform_0(%arg0: i32) -> (i32, i32, i32, i32) {
    %c0_i32 = arith.constant 0 : i32
    %c0_i32_0 = arith.constant 0 : i32
    %c0_i32_1 = arith.constant 0 : i32
    %c0_i32_2 = arith.constant 0 : i32
    return %arg0, %c0_i32, %c0_i32_0, %c0_i32_1 : i32, i32, i32, i32
  }
  func.func @transform_1(%arg0: i32) -> (i32, i32) {
    %c0_i32 = arith.constant 0 : i32
    %c0_i32_0 = arith.constant 0 : i32
    %c0_i32_1 = arith.constant 0 : i32
    return %c0_i32, %c0_i32_0 : i32, i32
  }
  func.func @transform_2(%arg0: i32) -> (i32, i32) {
    %c0_i32 = arith.constant 0 : i32
    %c0_i32_0 = arith.constant 0 : i32
    %c0_i32_1 = arith.constant 0 : i32
    return %c0_i32, %c0_i32_0 : i32, i32
  }
  func.func @transform_3(%arg0: i32) -> (i32, i32) {
    %c0_i32 = arith.constant 0 : i32
    %c0_i32_0 = arith.constant 0 : i32
    %c0_i32_1 = arith.constant 0 : i32
    return %c0_i32, %c0_i32_0 : i32, i32
  }
  func.func @transform_4(%arg0: i32) -> (i32, i32) {
    %c0_i32 = arith.constant 0 : i32
    %c0_i32_0 = arith.constant 0 : i32
    return %arg0, %c0_i32 : i32, i32
  }
}

</mosaic_0001>

<bundles_post_ra>
// kernel: tpu_custom_call.1
= control target key start
LH: loop header
LB: loop body
LE: loop exit
PB: predicated region body
PF: predicated region fallthrough
CT: control target
= control target key end

     0   :  { %9 = vsyncpa [#allocation3], 0  ;;  %s3117_s0 = inlined_call_operand.hbm [shape: f32[16,4,4,256], index: 0, kind: input, shape index: {}]   ;;  %s3118_s1 = inlined_call_operand.vmem [shape: f32[4,4], index: 1, kind: input, shape index: {}]   ;;  %s3119_s2 = inlined_call_operand.vmem [shape: f32[1,4], index: 2, kind: input, shape index: {}]   ;;  %s3120_s3 = inlined_call_operand.vmem [shape: f32[16,4], index: 3, kind: input, shape index: {}]   ;;  %s3121_s4 = inlined_call_operand.hbm [shape: f32[16,16], index: 4, kind: output, shape index: {}]  }
   0x1   :  { %11 = vsyncpa [#allocation3 + $0x1], 0 }
   0x2   :  { %12 = vsyncpa [#allocation4], 0 }
   0x3   :  { %14 = vsyncpa [#allocation4 + $0x1], 0  ;;  %s2447_s15 = smov 0   ;;  %s2449_s16 = smov 0  }
   0x4   :  { %s2451_s17 = smov 0   ;;  %s2453_s18 = smov 0  }
   0x5 LB: > { %s2468_s19 = sadd.s32 4294967295, %s2413_s18   ;;  %s2206_s20 = sadd.s32 4294967294, %s2413_s18   ;;  %s2413_s18 = sphi %s2453_s18, %s3208_s18   ;;  %s2409_s17 = sphi %s2451_s17, %s3207_s17   ;;  %s2405_s16 = sphi %s2449_s16, %s3206_s16   ;;  %s2401_s15 = sphi %s2447_s15, %s3205_s15  }
   0x6   : > { %s2472_s21 = sadd.s32 1, %s2413_s18   ;;  %s27_s22 = sadd.s32 1, %s2409_s17 }
   0x7   : > { %s24_s23 = ssub.s32 %s2413_s18, %s2472_s21  ;;  %p34_p0 = scmp.ne.s32.totalorder %s2409_s17, %s2405_s16 }
   0x8   : > { %p25_p1 = scmp.eq.s32.totalorder %s24_s23, 0  ;;  %p35_p2 = scmp.eq.s32.totalorder %s2413_s18, 0 }
   0x9   : > { %p40_p3 = scmp.ne.s32.totalorder %s2405_s16, %s2401_s15  ;;  %p41_p4 = scmp.eq.s32.totalorder %s2468_s19, 0 }
   0xa   : > { %s2484_s24 = scalar_select %p25_p1, %s2409_s17, %s27_s22  }
   0xb   : > { %p2486_p5 = por %p35_p2, %p34_p0  ;;  %p2490_p6 = por %p41_p4, %p40_p3 }
   0xc   : > { %p127_p7 = scmp.eq.s32.totalorder %s2468_s19, 1  ;;  %p133_p8 = scmp.eq.s32.totalorder %s2206_s20, 1 }
   0xd   : > { %s3149_s26 = scalar_select %p2490_p6, 1, 0 }
   0xe   : > { %p2248_p10 = scmp.lt.s32.totalorder %s2413_s18, 2  ;;  %p2497_p11 = por %p127_p7, %p34_p0 }
   0xf   : > { %p2501_p12 = por %p133_p8, %p40_p3  ;;  %s162_s29 = sand.u32 1, %s2409_s17  }
  0x10   : > { %s3150_s27 = scalar_select %p2497_p11, 1, 0 }
  0x11   : > { %s3151_s28 = scalar_select %p2501_p12, 1, 0 }
  0x12   : > { %s2225_s30 = sshll.u32 %s2413_s18, 12  ;;  %s2209_s5 = sshll.u32 %s162_s29, 8 }
  0x13   : > { %s2510_s8 = scalar_lea.hbm %s3117_s0, %s2225_s30  ;;  %s166_s9 = scalar_lea.vmem [#allocation2], %s2209_s5 }
  0x14   : > { %s174_s10 = sshll.u32 %s166_s9, 4  ;;  %p2514_p13 = pnand %p2248_p10, %p2486_p5  ;;  %s2518_s10 = int_to_ptr.vmem [resolvable:$true] %s174_s10 }
  0x15   : > { %s2520_s12 = scalar_lea.sflag [#allocation3], %s162_s29  ;;  %s2321_s13 = scalar_lea.hbm %s2510_s8, 4096 }
  0x16   : > { %p2322_p0 = scmp.ne.s32.totalorder %s2510_s8, %s2321_s13  ;;  %p2323_p1 = pneg %p2514_p13 }
  0x17   : > { %s2326_s22 = scalar_lea.hbm %s3117_s0, 8192  ;;  %p2327_p4 = scmp.lt.s32.totalorder %s2510_s8, %s3117_s0 }
  0x18   : > { %p2324_p2 = pnand %p2323_p1, %p2322_p0  ;;  %p2328_p5 = scmp.lt.s32.totalorder %s2326_s22, %s2321_s13 }
  0x1a   : > { %p2325_p3 = pneg %p2324_p2  ;;  %p2329_p7 = por %p2328_p5, %p2327_p4 }
  0x1c   : > { %p2330_p8 = pnand %p2329_p7, %p2325_p3 }
  0x1e   : > { %2333 = shalt.err (!%p2330_p8)
}
  0x1f   : > { %s2334_s29 = scalar_lea.vmem %s2518_s10, 4096  ;;  %s2415_s30 = smov [#allocation2]  }
  0x20   : > { %p2335_p10 = scmp.ne.s32.totalorder %s2518_s10, %s2334_s29  ;;  %s2339_s5 = sshll.u32 %s2415_s30, 4  ;;  %s2340_s5 = int_to_ptr.vmem [resolvable:$false] %s2339_s5 }
  0x21   : > { %s2341_s6 = scalar_lea.vmem %s2340_s5, 8192  ;;  %p2342_p2 = scmp.lt.s32.totalorder %s2518_s10, %s2340_s5 }
  0x22   : > { %p2337_p9 = pnand %p2335_p10, %p2323_p1  ;;  %p2343_p12 = scmp.lt.s32.totalorder %s2341_s6, %s2334_s29 }
  0x24   : > { %p2338_p0 = pneg %p2337_p9  ;;  %p2344_p11 = por %p2343_p12, %p2342_p2 }
  0x26   : > { %p2345_p6 = pnand %p2344_p11, %p2338_p0 }
  0x28   : > { %2348 = shalt.err (!%p2345_p6)
}
  0x29   : > { %s2416_s7 = smov 128   ;;  %s2417_s9 = smov 8  }
  0x2a   : > { %2243 = dma.hbm_to_vmem [thread:$0]  (!%p2514_p13), %s2510_s8, 4096, %s2518_s10, %s2520_s12, %s2416_s7, %s2416_s7, %s2417_s9  }
  0x2b   : > { %p2213_p9 = scmp.ge.s32.totalorder %s2413_s18, 1  ;;  %p182_p1 = scmp.lt.s32.totalorder %s2413_s18, 3 }
  0x2d   : > { %p183_p3 = pnand %p2213_p9, %p182_p1 }
  0x2f   : > { %186 = sbr.rel (%p183_p3) target bundleno = 1046 (0x416), region = 36 }
  0x34   : > { %s2544_s13 = sand.u32 1, %s2405_s16   ;;  %p3153_p6 = scmp.ne.s32.totalorder %s3149_s26, 0 }
  0x35   : > { %s2214_s14 = sshll.u32 %s2544_s13, 8  ;;  %s189_s20 = scalar_lea.sflag [#allocation3], %s2544_s13 }
  0x36   : > { %s2548_s22 = scalar_lea.vmem [#allocation2], %s2214_s14 }
  0x37   : > { %2392 = dma.done.wait (%p3153_p6), %s189_s20, 4096  }
  0x38   : > { %2394 = vsyncadd (%p3153_p6), %s189_s20, 4294963200  ;;  %vm346_vm0 = vcmask 1043456   ;;  %v226_v0 = vld [vmem:[%s2548_s22 + $0x40] sm:$0xff]  ;;  %v227_v1 = vld [vmem:[%s2548_s22 + $0x48] sm:$0xff]  ;;  %vm923_vm1 = vcmask 1041409   ;;  %vm925_vm2 = vcmask 1042434  }
  0x39   : > { %v228_v2 = vld [vmem:[%s2548_s22 + $0x50] sm:$0xff]  ;;  %v229_v3 = vld [vmem:[%s2548_s22 + $0x58] sm:$0xff]  ;;  %v290_v4 = vcombine.high %v226_v0, %v226_v0  ;;  %v291_v5 = vcombine.high %v227_v1, %v227_v1  ;;  %v459_v7 = vsel %vm346_vm0, %v226_v0, 0.0  ;;  %v473_v10 = vsel %vm346_vm0, %v227_v1, 0.0  ;;  %v218_v56 = vld [vmem:[%s2548_s22] sm:$0xff]  ;;  %s2215_s30 = sshll.u32 %s2544_s13, 3 }
  0x3a   : > { %v292_v6 = vcombine.high %v228_v2, %v228_v2  ;;  %v293_v8 = vcombine.high %v229_v3, %v229_v3  ;;  %v460_v9 = vrot.slane %v459_v7, 4  ;;  %v487_v11 = vsel %vm346_vm0, %v228_v2, 0.0  ;;  %v219_v61 = vld [vmem:[%s2548_s22 + $0x8] sm:$0xff]  ;;  %v220_v2 = vld [vmem:[%s2548_s22 + $0x10] sm:$0xff]  ;;  %s2221_s5 = sshll.u32 %s2468_s19, 7  ;;  %s216_s6 = scalar_lea.vmem [#allocation5], %s2215_s30 }
  0x3b   : > { %v466_v12 = vsel %vm346_vm0, %v290_v4, 0.0  ;;  %v474_v13 = vrot.slane %v473_v10, 4  ;;  %v480_v14 = vsel %vm346_vm0, %v291_v5, 0.0  ;;  %v488_v15 = vrot.slane %v487_v11, 4  ;;  %s2136_s7 = sshll.u32 %s216_s6, 4  ;;  %s3074_s20 = scalar_lea.hbm %s3121_s4, %s2221_s5  ;;  %s3076_s7 = int_to_ptr.vmem [resolvable:$true] %s2136_s7 }
  0x3c   : > { %v461_v16 = vadd.f32 %v460_v9, %v459_v7  ;;  %v467_v17 = vrot.slane %v466_v12, 4  ;;  %v481_v18 = vrot.slane %v480_v14, 4  ;;  %v494_v19 = vsel %vm346_vm0, %v292_v6, 0.0  ;;  %v221_v6 = vld [vmem:[%s2548_s22 + $0x18] sm:$0xff]  ;;  %s2349_s26 = scalar_lea.vmem %s3076_s7, 128  ;;  %p3202_p12 = scmp.ne.s32.totalorder %s3150_s27, 0 }
  0x3d   : > { %v475_v20 = vadd.f32 %v474_v13, %v473_v10  ;;  %v489_v21 = vadd.f32 %v488_v15, %v487_v11  ;;  %v495_v22 = vrot.slane %v494_v19, 4  ;;  %v501_v23 = vsel %vm346_vm0, %v229_v3, 0.0  ;;  %p2350_p11 = scmp.ne.s32.totalorder %s3076_s7, %s2349_s26  ;;  %s2421_s19 = smov [#allocation5]  }
  0x3e   : > { %v462_v24 = vrot.slane %v461_v16, 2  ;;  %v468_v25 = vadd.f32 %v467_v17, %v466_v12  ;;  %v482_v26 = vadd.f32 %v481_v18, %v480_v14  ;;  %v502_v27 = vrot.slane %v501_v23, 4  ;;  %s2353_s8 = sshll.u32 %s2421_s19, 4  ;;  %s2354_s8 = int_to_ptr.vmem [resolvable:$false] %s2353_s8 }
  0x3f   : > { %v476_v28 = vrot.slane %v475_v20, 2  ;;  %v490_v29 = vrot.slane %v489_v21, 2  ;;  %v496_v30 = vadd.f32 %v495_v22, %v494_v19  ;;  %v508_v31 = vsel %vm346_vm0, %v293_v8, 0.0  ;;  %p2351_p13 = pnand %p2350_p11, %p3202_p12  ;;  %s2355_s10 = scalar_lea.vmem %s2354_s8, 256 }
  0x40   : > { %v463_v32 = vadd.f32 %v462_v24, %v461_v16  ;;  %v469_v33 = vrot.slane %v468_v25, 2  ;;  %v483_v34 = vrot.slane %v482_v26, 2  ;;  %v503_v35 = vadd.f32 %v502_v27, %v501_v23  ;;  %p2356_p5 = scmp.lt.s32.totalorder %s3076_s7, %s2354_s8  ;;  %p2357_p7 = scmp.lt.s32.totalorder %s2355_s10, %s2349_s26 }
  0x41   : > { %v477_v36 = vadd.f32 %v476_v28, %v475_v20  ;;  %v491_v37 = vadd.f32 %v490_v29, %v489_v21  ;;  %v497_v38 = vrot.slane %v496_v30, 2  ;;  %v509_v39 = vrot.slane %v508_v31, 4  ;;  %p2352_p4 = pneg %p2351_p13 }
  0x42   : > { %vm927_vm3 = vcmask 1043459   ;;  %v464_v40 = vrot.slane %v463_v32, 1  ;;  %v470_v41 = vadd.f32 %v469_v33, %v468_v25  ;;  %v484_v42 = vadd.f32 %v483_v34, %v482_v26  ;;  %p2358_p8 = por %p2357_p7, %p2356_p5 }
  0x43   : > { %v504_v43 = vrot.slane %v503_v35, 2  ;;  %v478_v44 = vrot.slane %v477_v36, 1  ;;  %v492_v45 = vrot.slane %v491_v37, 1  ;;  %v498_v46 = vadd.f32 %v497_v38, %v496_v30 }
  0x44   : > { %v510_v47 = vadd.f32 %v509_v39, %v508_v31  ;;  %v465_v48 = vadd.f32 %v464_v40, %v463_v32  ;;  %v471_v49 = vrot.slane %v470_v41, 1  ;;  %v485_v50 = vrot.slane %v484_v42, 1  ;;  %p2359_p10 = pnand %p2358_p8, %p2352_p4 }
  0x45   : > { %v505_v51 = vadd.f32 %v504_v43, %v503_v35  ;;  %v479_v52 = vadd.f32 %v478_v44, %v477_v36  ;;  %v493_v53 = vadd.f32 %v492_v45, %v491_v37  ;;  %v499_v54 = vrot.slane %v498_v46, 1 }
  0x46   : > { %v511_v55 = vrot.slane %v510_v47, 2  ;;  %v472_v57 = vadd.f32 %v471_v49, %v470_v41  ;;  %v486_v58 = vadd.f32 %v485_v50, %v484_v42  ;;  %v2567_v60 = vmul.f32 0.25, %v465_v48 }
  0x47   : > { %v506_v59 = vrot.slane %v505_v51, 1  ;;  %v500_v62 = vadd.f32 %v499_v54, %v498_v46  ;;  %v2570_v0 = vmul.f32 0.25, %v479_v52  ;;  %v2572_v1 = vmul.f32 0.25, %v493_v53 }
  0x48   : > { %v512_v63 = vadd.f32 %v511_v55, %v510_v47  ;;  %v2575_v4 = vmul.f32 0.25, %v472_v57  ;;  %v2577_v5 = vmul.f32 0.25, %v486_v58  ;;  %v282_v7 = vcombine.high %v218_v56, %v218_v56 }
  0x49   : > { %v507_v3 = vadd.f32 %v506_v59, %v505_v51  ;;  %v2580_v9 = vmul.f32 0.25, %v500_v62  ;;  %v938_v10 = vsel %vm923_vm1, %v2570_v0, %v2567_v60  ;;  %v283_v11 = vcombine.high %v219_v61, %v219_v61 }
  0x4a   : > { %v513_v8 = vrot.slane %v512_v63, 1  ;;  %v939_v13 = vsel %vm925_vm2, %v2572_v1, %v938_v10  ;;  %v941_v14 = vsel %vm923_vm1, %v2577_v5, %v2575_v4  ;;  %v284_v15 = vcombine.high %v220_v2, %v220_v2  ;;  %v222_v10 = vld [vmem:[%s2548_s22 + $0x20] sm:$0xff] }
  0x4b   : > { %v2585_v12 = vmul.f32 0.25, %v507_v3  ;;  %v942_v17 = vsel %vm925_vm2, %v2580_v9, %v941_v14  ;;  %v285_v18 = vcombine.high %v221_v6, %v221_v6  ;;  %v347_v19 = vsel %vm346_vm0, %v218_v56, 0.0 }
  0x4c   : > { %v514_v16 = vadd.f32 %v513_v8, %v512_v63  ;;  %v348_v21 = vrot.slane %v347_v19, 4  ;;  %v354_v22 = vsel %vm346_vm0, %v282_v7, 0.0  ;;  %v361_v23 = vsel %vm346_vm0, %v219_v61, 0.0 }
  0x4d   : > { %v940_v20 = vsel %vm927_vm3, %v2585_v12, %v939_v13  ;;  %v355_v26 = vrot.slane %v354_v22, 4  ;;  %v362_v27 = vrot.slane %v361_v23, 4  ;;  %v368_v29 = vsel %vm346_vm0, %v283_v11, 0.0 }
  0x4e   : > { %v2599_v24 = vmul.f32 0.25, %v514_v16  ;;  %v1000_v25 = vsel %vm346_vm0, %v940_v20, 0.0  ;;  %v349_v28 = vadd.f32 %v348_v21, %v347_v19  ;;  %v375_v30 = vsel %vm346_vm0, %v220_v2, 0.0  ;;  %v223_v16 = vld [vmem:[%s2548_s22 + $0x28] sm:$0xff]  ;;  %v224_v21 = vld [vmem:[%s2548_s22 + $0x30] sm:$0xff] }
  0x4f   : > { %v382_v31 = vsel %vm346_vm0, %v284_v15, 0.0  ;;  %v356_v33 = vadd.f32 %v355_v26, %v354_v22  ;;  %v363_v34 = vadd.f32 %v362_v27, %v361_v23  ;;  %v369_v35 = vrot.slane %v368_v29, 4  ;;  %v225_v26 = vld [vmem:[%s2548_s22 + $0x38] sm:$0xff] }
  0x50   : > { %v943_v32 = vsel %vm927_vm3, %v2599_v24, %v942_v17  ;;  %v350_v37 = vrot.slane %v349_v28, 2  ;;  %v376_v38 = vrot.slane %v375_v30, 4  ;;  %v383_v39 = vrot.slane %v382_v31, 4 }
  0x51   : > { %v1001_v36 = vsel %vm346_vm0, %v943_v32, 0.0  ;;  %v357_v41 = vrot.slane %v356_v33, 2  ;;  %v364_v42 = vrot.slane %v363_v34, 2  ;;  %v370_v43 = vadd.f32 %v369_v35, %v368_v29 }
  0x52   : > { %v1002_v40 = vadd.f32 %v1001_v36, %v1000_v25  ;;  %v351_v44 = vadd.f32 %v350_v37, %v349_v28  ;;  %v377_v45 = vadd.f32 %v376_v38, %v375_v30  ;;  %v384_v46 = vadd.f32 %v383_v39, %v382_v31 }
  0x53   : > { %v389_v47 = vsel %vm346_vm0, %v221_v6, 0.0  ;;  %v358_v48 = vadd.f32 %v357_v41, %v356_v33  ;;  %v365_v49 = vadd.f32 %v364_v42, %v363_v34  ;;  %v371_v50 = vrot.slane %v370_v43, 2 }
  0x54   : > { %1003 = vadd.xlane.f32.xlu1 %v1002_v40  ;;  %v390_v51 = vrot.slane %v389_v47, 4  ;;  %v352_v52 = vrot.slane %v351_v44, 1  ;;  %v378_v53 = vrot.slane %v377_v45, 2  ;;  %v385_v54 = vrot.slane %v384_v46, 2 }
  0x55   : > { %v396_v55 = vsel %vm346_vm0, %v285_v18, 0.0  ;;  %v359_v56 = vrot.slane %v358_v48, 1  ;;  %v366_v57 = vrot.slane %v365_v49, 1  ;;  %v372_v58 = vadd.f32 %v371_v50, %v370_v43 }
  0x56   : > { %v391_v59 = vadd.f32 %v390_v51, %v389_v47  ;;  %v353_v61 = vadd.f32 %v352_v52, %v351_v44  ;;  %v379_v62 = vadd.f32 %v378_v53, %v377_v45  ;;  %v386_v63 = vadd.f32 %v385_v54, %v384_v46 }
  0x57   : > { %v397_v2 = vrot.slane %v396_v55, 4  ;;  %v360_v3 = vadd.f32 %v359_v56, %v358_v48  ;;  %v367_v6 = vadd.f32 %v366_v57, %v365_v49  ;;  %v373_v7 = vrot.slane %v372_v58, 1 }
  0x58   : > { %v392_v8 = vrot.slane %v391_v59, 2  ;;  %v380_v11 = vrot.slane %v379_v62, 1  ;;  %v387_v13 = vrot.slane %v386_v63, 1  ;;  %v2611_v15 = vmul.f32 0.25, %v353_v61 }
  0x59   : > { %v398_v14 = vadd.f32 %v397_v2, %v396_v55  ;;  %v374_v17 = vadd.f32 %v373_v7, %v372_v58  ;;  %v2614_v19 = vmul.f32 0.25, %v360_v3  ;;  %v2616_v20 = vmul.f32 0.25, %v367_v6 }
  0x5a   : > { %v393_v18 = vadd.f32 %v392_v8, %v391_v59  ;;  %v381_v22 = vadd.f32 %v380_v11, %v379_v62  ;;  %v388_v23 = vadd.f32 %v387_v13, %v386_v63  ;;  %v286_v27 = vcombine.high %v222_v10, %v222_v10 }
  0x5b   : > { %v399_v25 = vrot.slane %v398_v14, 2  ;;  %v2620_v29 = vmul.f32 0.25, %v374_v17  ;;  %v924_v30 = vsel %vm923_vm1, %v2616_v20, %v2611_v15  ;;  %v287_v31 = vcombine.high %v223_v16, %v223_v16 }
  0x5c   : > { %v394_v28 = vrot.slane %v393_v18, 1  ;;  %v2625_v33 = vmul.f32 0.25, %v381_v22  ;;  %v2627_v34 = vmul.f32 0.25, %v388_v23  ;;  %v288_v35 = vcombine.high %v224_v21, %v224_v21 }
  0x5d   : > { %v400_v32 = vadd.f32 %v399_v25, %v398_v14  ;;  %v929_v37 = vsel %vm923_vm1, %v2620_v29, %v2614_v19  ;;  %v289_v38 = vcombine.high %v225_v26, %v225_v26  ;;  %v403_v39 = vsel %vm346_vm0, %v222_v10, 0.0 }
  0x5e   : > { %v395_v36 = vadd.f32 %v394_v28, %v393_v18  ;;  %v926_v41 = vsel %vm925_vm2, %v2625_v33, %v924_v30  ;;  %v930_v42 = vsel %vm925_vm2, %v2627_v34, %v929_v37  ;;  %v404_v43 = vrot.slane %v403_v39, 4 }
  0x5f   : > { %v401_v40 = vrot.slane %v400_v32, 1  ;;  %v410_v45 = vsel %vm346_vm0, %v286_v27, 0.0  ;;  %v417_v46 = vsel %vm346_vm0, %v223_v16, 0.0  ;;  %v424_v47 = vsel %vm346_vm0, %v287_v31, 0.0 }
  0x60   : > { %v2637_v44 = vmul.f32 0.25, %v395_v36  ;;  %v405_v49 = vadd.f32 %v404_v43, %v403_v39  ;;  %v411_v50 = vrot.slane %v410_v45, 4  ;;  %v418_v51 = vrot.slane %v417_v46, 4  ;;  %v234_v39 = vld [vmem:[%s2548_s22 + $0x80] sm:$0xff] }
  0x61   : > { %v402_v48 = vadd.f32 %v401_v40, %v400_v32  ;;  %v425_v53 = vrot.slane %v424_v47, 4  ;;  %v431_v54 = vsel %vm346_vm0, %v224_v21, 0.0  ;;  %v438_v55 = vsel %vm346_vm0, %v288_v35, 0.0 }
  0x62   : > { %v928_v52 = vsel %vm927_vm3, %v2637_v44, %v926_v41  ;;  %v406_v58 = vrot.slane %v405_v49, 2  ;;  %v412_v59 = vadd.f32 %v411_v50, %v410_v45  ;;  %v419_v61 = vadd.f32 %v418_v51, %v417_v46  ;;  %v236_v50 = vld [vmem:[%s2548_s22 + $0x90] sm:$0xff] }
  0x63   : > { %v2646_v56 = vmul.f32 0.25, %v402_v48  ;;  %v990_v57 = vsel %vm346_vm0, %v928_v52, 0.0  ;;  %v426_v62 = vadd.f32 %v425_v53, %v424_v47  ;;  %v432_v63 = vrot.slane %v431_v54, 4 }
  0x64   : > { %v439_v2 = vrot.slane %v438_v55, 4  ;;  %v407_v6 = vadd.f32 %v406_v58, %v405_v49  ;;  %v413_v7 = vrot.slane %v412_v59, 2  ;;  %v445_v8 = vsel %vm346_vm0, %v225_v26, 0.0  ;;  %v235_v49 = vld [vmem:[%s2548_s22 + $0x88] sm:$0xff] }
  0x65   : > { %v931_v3 = vsel %vm927_vm3, %v2646_v56, %v930_v42  ;;  %v420_v11 = vrot.slane %v419_v61, 2  ;;  %v427_v13 = vrot.slane %v426_v62, 2  ;;  %v433_v14 = vadd.f32 %v432_v63, %v431_v54 }
  0x66   : > { %v991_v10 = vsel %vm346_vm0, %v931_v3, 0.0  ;;  %v408_v17 = vrot.slane %v407_v6, 1  ;;  %v414_v18 = vadd.f32 %v413_v7, %v412_v59  ;;  %v440_v21 = vadd.f32 %v439_v2, %v438_v55  ;;  %v2666_v59 = vld [vmem:[%s2548_s22 + $0x98] sm:$0xff] }
  0x67   : > { %v992_v16 = vadd.f32 %v991_v10, %v990_v57  ;;  %v421_v22 = vadd.f32 %v420_v11, %v419_v61  ;;  %v428_v23 = vadd.f32 %v427_v13, %v426_v62  ;;  %v434_v25 = vrot.slane %v433_v14, 2 }
  0x68   : > { %v446_v27 = vrot.slane %v445_v8, 4  ;;  %v409_v28 = vadd.f32 %v408_v17, %v407_v6  ;;  %v415_v30 = vrot.slane %v414_v18, 1  ;;  %v441_v31 = vrot.slane %v440_v21, 2 }
  0x69   : > { %993 = vadd.xlane.f32.xlu0 %v992_v16  ;;  %v452_v26 = vsel %vm346_vm0, %v289_v38, 0.0  ;;  %v422_v32 = vrot.slane %v421_v22, 1  ;;  %v429_v35 = vrot.slane %v428_v23, 1  ;;  %v435_v36 = vadd.f32 %v434_v25, %v433_v14 }
  0x6a   : > { %v447_v37 = vadd.f32 %v446_v27, %v445_v8  ;;  %v416_v40 = vadd.f32 %v415_v30, %v414_v18  ;;  %v442_v41 = vadd.f32 %v441_v31, %v440_v21  ;;  %v453_v42 = vrot.slane %v452_v26, 4 }
  0x6b   : > { %v2655_v43 = vmul.f32 0.25, %v409_v28  ;;  %v423_v45 = vadd.f32 %v422_v32, %v421_v22  ;;  %v430_v46 = vadd.f32 %v429_v35, %v428_v23  ;;  %v436_v47 = vrot.slane %v435_v36, 1 }
  0x6c   : > { %v448_v48 = vrot.slane %v447_v37, 2  ;;  %v443_v51 = vrot.slane %v442_v41, 1  ;;  %v454_v52 = vadd.f32 %v453_v42, %v452_v26  ;;  %v2659_v38 = vmul.f32 0.25, %v416_v40 }
  0x6d   : > { %v298_v53 = vcombine.high %v234_v39, %v234_v39  ;;  %v437_v54 = vadd.f32 %v436_v47, %v435_v36  ;;  %v2661_v57 = vmul.f32 0.25, %v423_v45  ;;  %v2663_v58 = vmul.f32 0.25, %v430_v46 }
  0x6e   : > { %v449_v55 = vadd.f32 %v448_v48, %v447_v37  ;;  %v444_v61 = vadd.f32 %v443_v51, %v442_v41  ;;  %v455_v62 = vrot.slane %v454_v52, 2  ;;  %v299_v63 = vcombine.high %v235_v49, %v235_v49 }
  0x6f   : > { %v300_v2 = vcombine.high %v236_v50, %v236_v50  ;;  %v2668_v6 = vmul.f32 0.25, %v437_v54  ;;  %v932_v7 = vsel %vm923_vm1, %v2661_v57, %v2655_v43  ;;  %v935_v8 = vsel %vm923_vm1, %v2663_v58, %v2659_v38 }
  0x70   : > { %v450_v3 = vrot.slane %v449_v55, 1  ;;  %v456_v10 = vadd.f32 %v455_v62, %v454_v52  ;;  %v2676_v11 = vmul.f32 0.25, %v444_v61  ;;  %v301_v13 = vcombine.high %v2666_v59, %v2666_v59 }
  0x71   : > { %v571_v14 = vsel %vm346_vm0, %v234_v39, 0.0  ;;  %v933_v17 = vsel %vm925_vm2, %v2668_v6, %v932_v7  ;;  %v578_v21 = vsel %vm346_vm0, %v298_v53, 0.0  ;;  %v585_v27 = vsel %vm346_vm0, %v235_v49, 0.0 }
  0x72   : > { %v451_v16 = vadd.f32 %v450_v3, %v449_v55  ;;  %v572_v18 = vrot.slane %v571_v14, 4  ;;  %v457_v22 = vrot.slane %v456_v10, 1  ;;  %v936_v23 = vsel %vm925_vm2, %v2676_v11, %v935_v8 }
  0x73   : > { %v579_v25 = vrot.slane %v578_v21, 4  ;;  %v586_v31 = vrot.slane %v585_v27, 4  ;;  %v592_v26 = vsel %vm346_vm0, %v299_v63, 0.0  ;;  %v599_v37 = vsel %vm346_vm0, %v236_v50, 0.0 }
  0x74   : > { %v2687_v28 = vmul.f32 0.25, %v451_v16  ;;  %v573_v30 = vadd.f32 %v572_v18, %v571_v14  ;;  %v458_v32 = vadd.f32 %v457_v22, %v456_v10  ;;  %v593_v36 = vrot.slane %v592_v26, 4 }
  0x75   : > { %v580_v35 = vadd.f32 %v579_v25, %v578_v21  ;;  %v587_v41 = vadd.f32 %v586_v31, %v585_v27  ;;  %v600_v42 = vrot.slane %v599_v37, 4  ;;  %v606_v53 = vsel %vm346_vm0, %v300_v2, 0.0 }
  0x76   : > { %v934_v39 = vsel %vm927_vm3, %v2687_v28, %v933_v17  ;;  %v574_v40 = vrot.slane %v573_v30, 2  ;;  %v2693_v45 = vmul.f32 0.25, %v458_v32  ;;  %v594_v48 = vadd.f32 %v593_v36, %v592_v26 }
  0x77   : > { %v995_v46 = vsel %vm346_vm0, %v934_v39, 0.0  ;;  %v581_v47 = vrot.slane %v580_v35, 2  ;;  %v588_v51 = vrot.slane %v587_v41, 2  ;;  %v601_v52 = vadd.f32 %v600_v42, %v599_v37 }
  0x78   : > { %v575_v49 = vadd.f32 %v574_v40, %v573_v30  ;;  %v937_v50 = vsel %vm927_vm3, %v2693_v45, %v936_v23  ;;  %v595_v55 = vrot.slane %v594_v48, 2  ;;  %v607_v61 = vrot.slane %v606_v53, 4  ;;  %v230_v30 = vld [vmem:[%s2548_s22 + $0x60] sm:$0xff] }
  0x79   : > { %v582_v54 = vadd.f32 %v581_v47, %v580_v35  ;;  %v996_v62 = vsel %vm346_vm0, %v937_v50, 0.0  ;;  %v589_v3 = vadd.f32 %v588_v51, %v587_v41  ;;  %v602_v7 = vrot.slane %v601_v52, 2  ;;  %v231_v41 = vld [vmem:[%s2548_s22 + $0x68] sm:$0xff] }
  0x7a   : > { %v576_v63 = vrot.slane %v575_v49, 1  ;;  %v997_v8 = vadd.f32 %v996_v62, %v995_v46  ;;  %v596_v14 = vadd.f32 %v595_v55, %v594_v48  ;;  %v608_v16 = vadd.f32 %v607_v61, %v606_v53 }
  0x7b   : > { %v583_v10 = vrot.slane %v582_v54, 1  ;;  %v590_v18 = vrot.slane %v589_v3, 1  ;;  %v603_v21 = vadd.f32 %v602_v7, %v601_v52  ;;  %v613_v2 = vsel %vm346_vm0, %v2666_v59, 0.0  ;;  %v232_v59 = vld [vmem:[%s2548_s22 + $0x70] sm:$0xff] }
  0x7c   : > { %v577_v17 = vadd.f32 %v576_v63, %v575_v49  ;;  %998 = vadd.xlane.f32.xlu0 %v997_v8  ;;  %v597_v23 = vrot.slane %v596_v14, 1  ;;  %v609_v25 = vrot.slane %v608_v16, 2  ;;  %v614_v27 = vrot.slane %v613_v2, 4 }
  0x7d   : > { %v584_v22 = vadd.f32 %v583_v10, %v582_v54  ;;  %v591_v31 = vadd.f32 %v590_v18, %v589_v3  ;;  %v604_v26 = vrot.slane %v603_v21, 1  ;;  %v620_v32 = vsel %vm346_vm0, %v301_v13, 0.0  ;;  %v2715_v13 = vld [vmem:[%s2548_s22 + $0x78] sm:$0xff] }
  0x7e   : > { %v2704_v35 = vmul.f32 0.25, %v577_v17  ;;  %v598_v36 = vadd.f32 %v597_v23, %v596_v14  ;;  %v610_v37 = vadd.f32 %v609_v25, %v608_v16  ;;  %v615_v39 = vadd.f32 %v614_v27, %v613_v2 }
  0x7f   : > { %v621_v40 = vrot.slane %v620_v32, 4  ;;  %v605_v42 = vadd.f32 %v604_v26, %v603_v21  ;;  %v2708_v46 = vmul.f32 0.25, %v584_v22  ;;  %v2710_v47 = vmul.f32 0.25, %v591_v31 }
  0x80   : > { %3154 = vst [vmem:[#allocation8_spill] sm:$0xff] %v2704_v35  ;;  %v294_v48 = vcombine.high %v230_v30, %v230_v30  ;;  %v611_v49 = vrot.slane %v610_v37, 1  ;;  %v616_v51 = vrot.slane %v615_v39, 2  ;;  %v2712_v53 = vmul.f32 0.25, %v598_v36 }
  0x81   : > { %v622_v52 = vadd.f32 %v621_v40, %v620_v32  ;;  %v2717_v50 = vmul.f32 0.25, %v605_v42  ;;  %v950_v54 = vsel %vm923_vm1, %v2710_v47, %v2704_v35  ;;  %v295_v55 = vcombine.high %v231_v41, %v231_v41 }
  0x82   : > { %v296_v61 = vcombine.high %v232_v59, %v232_v59  ;;  %v612_v62 = vadd.f32 %v611_v49, %v610_v37  ;;  %v617_v63 = vadd.f32 %v616_v51, %v615_v39  ;;  %v953_v7 = vsel %vm923_vm1, %v2712_v53, %v2708_v46 }
  0x83   : > { %v623_v3 = vrot.slane %v622_v52, 2  ;;  %v951_v8 = vsel %vm925_vm2, %v2717_v50, %v950_v54  ;;  %v297_v10 = vcombine.high %v2715_v13, %v2715_v13  ;;  %v515_v14 = vsel %vm346_vm0, %v230_v30, 0.0 }
  0x84   : > { %v522_v16 = vsel %vm346_vm0, %v294_v48, 0.0  ;;  %v618_v17 = vrot.slane %v617_v63, 1  ;;  %v2731_v21 = vmul.f32 0.25, %v612_v62  ;;  %v516_v2 = vrot.slane %v515_v14, 4 }
  0x85   : > { %v624_v18 = vadd.f32 %v623_v3, %v622_v52  ;;  %v523_v22 = vrot.slane %v522_v16, 4  ;;  %v529_v23 = vsel %vm346_vm0, %v231_v41, 0.0  ;;  %v536_v25 = vsel %vm346_vm0, %v295_v55, 0.0 }
  0x86   : > { %v543_v27 = vsel %vm346_vm0, %v232_v59, 0.0  ;;  %v619_v31 = vadd.f32 %v618_v17, %v617_v63  ;;  %v954_v32 = vsel %vm925_vm2, %v2731_v21, %v953_v7  ;;  %v517_v30 = vadd.f32 %v516_v2, %v515_v14 }
  0x87   : > { %v625_v26 = vrot.slane %v624_v18, 1  ;;  %v524_v36 = vadd.f32 %v523_v22, %v522_v16  ;;  %v530_v37 = vrot.slane %v529_v23, 4  ;;  %v537_v39 = vrot.slane %v536_v25, 4 }
  0x88   : > { %v544_v40 = vrot.slane %v543_v27, 4  ;;  %v2738_v48 = vmul.f32 0.25, %v619_v31  ;;  %v518_v49 = vrot.slane %v517_v30, 2  ;;  %v550_v41 = vsel %vm346_vm0, %v296_v61, 0.0 }
  0x89   : > { %v626_v42 = vadd.f32 %v625_v26, %v624_v18  ;;  %v525_v51 = vrot.slane %v524_v36, 2  ;;  %v531_v52 = vadd.f32 %v530_v37, %v529_v23  ;;  %v538_v54 = vadd.f32 %v537_v39, %v536_v25 }
  0x8a   : > { %3155 = vst [vmem:[#allocation9_spill] sm:$0xff] %v2738_v48  ;;  %v545_v59 = vadd.f32 %v544_v40, %v543_v27  ;;  %v952_v62 = vsel %vm927_vm3, %v2738_v48, %v951_v8  ;;  %v519_v63 = vadd.f32 %v518_v49, %v517_v30  ;;  %v551_v3 = vrot.slane %v550_v41, 4 }
  0x8b   : > { %v2741_v55 = vmul.f32 0.25, %v626_v42  ;;  %v1010_v7 = vsel %vm346_vm0, %v952_v62, 0.0  ;;  %v526_v14 = vadd.f32 %v525_v51, %v524_v36  ;;  %v532_v16 = vrot.slane %v531_v52, 2 }
  0x8c   : > { %v539_v17 = vrot.slane %v538_v54, 2  ;;  %v520_v61 = vrot.slane %v519_v63, 1  ;;  %v546_v2 = vrot.slane %v545_v59, 2  ;;  %v552_v22 = vadd.f32 %v551_v3, %v550_v41  ;;  %v243_v3 = vld [vmem:[%s2548_s22 + $0xc8] sm:$0xff] }
  0x8d   : > { %v955_v18 = vsel %vm927_vm3, %v2741_v55, %v954_v32  ;;  %v527_v25 = vrot.slane %v526_v14, 1  ;;  %v533_v27 = vadd.f32 %v532_v16, %v531_v52  ;;  %v557_v32 = vsel %vm346_vm0, %v2715_v13, 0.0  ;;  %v242_v52 = vld [vmem:[%s2548_s22 + $0xc0] sm:$0xff]  ;;  %v244_v13 = vld [vmem:[%s2548_s22 + $0xd0] sm:$0xff] }
  0x8e   : > { %v1011_v23 = vsel %vm346_vm0, %v955_v18, 0.0  ;;  %v540_v31 = vadd.f32 %v539_v17, %v538_v54  ;;  %v521_v26 = vadd.f32 %v520_v61, %v519_v63  ;;  %v547_v30 = vadd.f32 %v546_v2, %v545_v59 }
  0x8f   : > { %v1012_v8 = vadd.f32 %v1011_v23, %v1010_v7  ;;  %v553_v37 = vrot.slane %v552_v22, 2  ;;  %v528_v36 = vadd.f32 %v527_v25, %v526_v14  ;;  %v534_v39 = vrot.slane %v533_v27, 1 }
  0x90   : > { %v541_v40 = vrot.slane %v540_v31, 1  ;;  %v548_v42 = vrot.slane %v547_v30, 1  ;;  %v558_v41 = vrot.slane %v557_v32, 4  ;;  %v564_v51 = vsel %vm346_vm0, %v297_v10, 0.0 }
  0x91   : > { %1013 = vadd.xlane.f32.xlu0 %v1012_v8  ;;  %v554_v49 = vadd.f32 %v553_v37, %v552_v22  ;;  %v535_v54 = vadd.f32 %v534_v39, %v533_v27  ;;  %v565_v59 = vrot.slane %v564_v51, 4  ;;  %v2753_v63 = vmul.f32 0.25, %v521_v26  ;;  %v2764_v22 = vld [vmem:[%s2548_s22 + $0xd8] sm:$0xff] }
  0x92   : > { %v542_v62 = vadd.f32 %v541_v40, %v540_v31  ;;  %v549_v7 = vadd.f32 %v548_v42, %v547_v30  ;;  %v559_v16 = vadd.f32 %v558_v41, %v557_v32  ;;  %v2756_v17 = vmul.f32 0.25, %v528_v36 }
  0x93   : > { %3156 = vst [vmem:[#allocation10_spill] sm:$0xff] %v2753_v63  ;;  %v555_v14 = vrot.slane %v554_v49, 1  ;;  %v566_v18 = vadd.f32 %v565_v59, %v564_v51  ;;  %v2759_v61 = vmul.f32 0.25, %v535_v54  ;;  %v306_v10 = vcombine.high %v242_v52, %v242_v52 }
  0x94   : > { %3157 = vst [vmem:[#allocation11_spill] sm:$0xff] %v2756_v17  ;;  %v2761_v2 = vmul.f32 0.25, %v542_v62  ;;  %v560_v25 = vrot.slane %v559_v16, 2  ;;  %v2766_v27 = vmul.f32 0.25, %v549_v7  ;;  %v307_v31 = vcombine.high %v243_v3, %v243_v3 }
  0x95   : > { %3158 = vst [vmem:[#allocation12_spill] sm:$0xff] %v2759_v61  ;;  %v556_v23 = vadd.f32 %v555_v14, %v554_v49  ;;  %v567_v8 = vrot.slane %v566_v18, 2  ;;  %v944_v26 = vsel %vm923_vm1, %v2759_v61, %v2753_v63  ;;  %v308_v37 = vcombine.high %v244_v13, %v244_v13 }
  0x96   : > { %3159 = vst [vmem:[#allocation13_spill] sm:$0xff] %v2761_v2  ;;  %3160 = vst [vmem:[#allocation14_spill] sm:$0xff] %v2766_v27  ;;  %v947_v30 = vsel %vm923_vm1, %v2761_v2, %v2756_v17  ;;  %v561_v36 = vadd.f32 %v560_v25, %v559_v16  ;;  %v945_v40 = vsel %vm925_vm2, %v2766_v27, %v944_v26  ;;  %v683_v49 = vsel %vm346_vm0, %v242_v52, 0.0 }
  0x97   : > { %v2774_v39 = vmul.f32 0.25, %v556_v23  ;;  %v309_v32 = vcombine.high %v2764_v22, %v2764_v22  ;;  %v568_v42 = vadd.f32 %v567_v8, %v566_v18  ;;  %v690_v41 = vsel %vm346_vm0, %v306_v10, 0.0 }
  0x98   : > { %v697_v51 = vsel %vm346_vm0, %v243_v3, 0.0  ;;  %v562_v54 = vrot.slane %v561_v36, 1  ;;  %v684_v59 = vrot.slane %v683_v49, 4  ;;  %v691_v7 = vrot.slane %v690_v41, 4 }
  0x99   : > { %3161 = vst [vmem:[#allocation15_spill] sm:$0xff] %v2774_v39  ;;  %v948_v62 = vsel %vm925_vm2, %v2774_v39, %v947_v30  ;;  %v569_v14 = vrot.slane %v568_v42, 1  ;;  %v698_v16 = vrot.slane %v697_v51, 4  ;;  %v704_v23 = vsel %vm346_vm0, %v307_v31, 0.0 }
  0x9a   : > { %v711_v25 = vsel %vm346_vm0, %v244_v13, 0.0  ;;  %v563_v26 = vadd.f32 %v562_v54, %v561_v36  ;;  %v685_v18 = vadd.f32 %v684_v59, %v683_v49  ;;  %v692_v8 = vadd.f32 %v691_v7, %v690_v41 }
  0x9b   : > { %v705_v52 = vrot.slane %v704_v23, 4  ;;  %v570_v27 = vadd.f32 %v569_v14, %v568_v42  ;;  %v699_v10 = vadd.f32 %v698_v16, %v697_v51  ;;  %v712_v61 = vrot.slane %v711_v25, 4 }
  0x9c   : > { %v718_v3 = vsel %vm346_vm0, %v308_v37, 0.0  ;;  %v2788_v2 = vmul.f32 0.25, %v563_v26  ;;  %v686_v30 = vrot.slane %v685_v18, 2  ;;  %v693_v39 = vrot.slane %v692_v8, 2 }
  0x9d   : > { %v706_v63 = vadd.f32 %v705_v52, %v704_v23  ;;  %v2790_v17 = vmul.f32 0.25, %v570_v27  ;;  %v700_v35 = vrot.slane %v699_v10, 2  ;;  %v713_v31 = vadd.f32 %v712_v61, %v711_v25 }
  0x9e   : > { %3162 = vst [vmem:[#allocation16_spill] sm:$0xff] %v2788_v2  ;;  %v719_v48 = vrot.slane %v718_v3, 4  ;;  %v946_v13 = vsel %vm927_vm3, %v2788_v2, %v945_v40  ;;  %v687_v36 = vadd.f32 %v686_v30, %v685_v18  ;;  %v694_v49 = vadd.f32 %v693_v39, %v692_v8  ;;  %v239_v30 = vld [vmem:[%s2548_s22 + $0xa8] sm:$0xff] }
  0x9f   : > { %3163 = vst [vmem:[#allocation17_spill] sm:$0xff] %v2790_v17  ;;  %v707_v42 = vrot.slane %v706_v63, 2  ;;  %v949_v41 = vsel %vm927_vm3, %v2790_v17, %v948_v62  ;;  %v1005_v37 = vsel %vm346_vm0, %v946_v13, 0.0  ;;  %v701_v51 = vadd.f32 %v700_v35, %v699_v10  ;;  %v238_v10 = vld [vmem:[%s2548_s22 + $0xa0] sm:$0xff] }
  0xa0   : > { %v714_v54 = vrot.slane %v713_v31, 2  ;;  %v1006_v59 = vsel %vm346_vm0, %v949_v41, 0.0  ;;  %v688_v27 = vrot.slane %v687_v36, 1  ;;  %v695_v7 = vrot.slane %v694_v49, 1  ;;  %v2809_v41 = vld [vmem:[%s2548_s22 + $0xb8] sm:$0xff] }
  0xa1   : > { %v708_v61 = vadd.f32 %v707_v42, %v706_v63  ;;  %v1007_v14 = vadd.f32 %v1006_v59, %v1005_v37  ;;  %v702_v16 = vrot.slane %v701_v51, 1  ;;  %v720_v23 = vadd.f32 %v719_v48, %v718_v3  ;;  %v240_v42 = vld [vmem:[%s2548_s22 + $0xb0] sm:$0xff] }
  0xa2   : > { %v715_v40 = vadd.f32 %v714_v54, %v713_v31  ;;  %v689_v39 = vadd.f32 %v688_v27, %v687_v36  ;;  %v696_v25 = vadd.f32 %v695_v7, %v694_v49  ;;  %v725_v62 = vsel %vm346_vm0, %v2764_v22, 0.0 }
  0xa3   : > { %v709_v26 = vrot.slane %v708_v61, 1  ;;  %1008 = vadd.xlane.f32.xlu1 %v1007_v14  ;;  %v703_v35 = vadd.f32 %v702_v16, %v701_v51  ;;  %v721_v8 = vrot.slane %v720_v23, 2  ;;  %v726_v52 = vrot.slane %v725_v62, 4 }
  0xa4   : > { %v716_v18 = vrot.slane %v715_v40, 1  ;;  %v732_v13 = vsel %vm346_vm0, %v309_v32, 0.0  ;;  %v2803_v31 = vmul.f32 0.25, %v689_v39  ;;  %v2805_v48 = vmul.f32 0.25, %v696_v25 }
  0xa5   : > { %v710_v63 = vadd.f32 %v709_v26, %v708_v61  ;;  %v722_v36 = vadd.f32 %v721_v8, %v720_v23  ;;  %v727_v49 = vadd.f32 %v726_v52, %v725_v62  ;;  %v733_v22 = vrot.slane %v732_v13, 4 }
  0xa6   : > { %3164 = vst [vmem:[#allocation18_spill] sm:$0xff] %v2803_v31  ;;  %3165 = vst [vmem:[#allocation19_spill] sm:$0xff] %v2805_v48  ;;  %v717_v3 = vadd.f32 %v716_v18, %v715_v40  ;;  %v2811_v37 = vmul.f32 0.25, %v703_v35  ;;  %v302_v54 = vcombine.high %v238_v10, %v238_v10  ;;  %v303_v59 = vcombine.high %v239_v30, %v239_v30 }
  0xa7   : > { %v2813_v51 = vmul.f32 0.25, %v710_v63  ;;  %v723_v27 = vrot.slane %v722_v36, 1  ;;  %v728_v7 = vrot.slane %v727_v49, 2  ;;  %v734_v32 = vadd.f32 %v733_v22, %v732_v13 }
  0xa8   : > { %3166 = vst [vmem:[#allocation20_spill] sm:$0xff] %v2811_v37  ;;  %v2815_v61 = vmul.f32 0.25, %v717_v3  ;;  %v962_v14 = vsel %vm923_vm1, %v2811_v37, %v2803_v31  ;;  %v304_v40 = vcombine.high %v240_v42, %v240_v42  ;;  %v305_v23 = vcombine.high %v2809_v41, %v2809_v41 }
  0xa9   : > { %3167 = vst [vmem:[#allocation21_spill] sm:$0xff] %v2813_v51  ;;  %v965_v16 = vsel %vm923_vm1, %v2813_v51, %v2805_v48  ;;  %v724_v39 = vadd.f32 %v723_v27, %v722_v36  ;;  %v729_v25 = vadd.f32 %v728_v7, %v727_v49  ;;  %v735_v26 = vrot.slane %v734_v32, 2 }
  0xaa   : > { %3168 = vst [vmem:[#allocation22_spill] sm:$0xff] %v2815_v61  ;;  %v963_v62 = vsel %vm925_vm2, %v2815_v61, %v962_v14  ;;  %v627_v35 = vsel %vm346_vm0, %v238_v10, 0.0  ;;  %v634_v18 = vsel %vm346_vm0, %v302_v54, 0.0  ;;  %v641_v8 = vsel %vm346_vm0, %v239_v30, 0.0 }
  0xab   : > { %v648_v52 = vsel %vm346_vm0, %v303_v59, 0.0  ;;  %v730_v63 = vrot.slane %v729_v25, 1  ;;  %v736_v13 = vadd.f32 %v735_v26, %v734_v32  ;;  %v2831_v3 = vmul.f32 0.25, %v724_v39 }
  0xac   : > { %v628_v22 = vrot.slane %v627_v35, 4  ;;  %v635_v31 = vrot.slane %v634_v18, 4  ;;  %v642_v36 = vrot.slane %v641_v8, 4  ;;  %v649_v49 = vrot.slane %v648_v52, 4 }
  0xad   : > { %3169 = vst [vmem:[#allocation23_spill] sm:$0xff] %v2831_v3  ;;  %v655_v27 = vsel %vm346_vm0, %v240_v42, 0.0  ;;  %v731_v7 = vadd.f32 %v730_v63, %v729_v25  ;;  %v737_v14 = vrot.slane %v736_v13, 1  ;;  %v966_v10 = vsel %vm925_vm2, %v2831_v3, %v965_v16 }
  0xae   : > { %v629_v54 = vadd.f32 %v628_v22, %v627_v35  ;;  %v636_v61 = vadd.f32 %v635_v31, %v634_v18  ;;  %v643_v30 = vadd.f32 %v642_v36, %v641_v8  ;;  %v650_v48 = vadd.f32 %v649_v49, %v648_v52 }
  0xaf   : > { %v656_v59 = vrot.slane %v655_v27, 4  ;;  %v738_v37 = vadd.f32 %v737_v14, %v736_v13  ;;  %v2836_v32 = vmul.f32 0.25, %v731_v7  ;;  %v662_v26 = vsel %vm346_vm0, %v304_v40, 0.0 }
  0xb0   : > { %v630_v39 = vrot.slane %v629_v54, 2  ;;  %v637_v51 = vrot.slane %v636_v61, 2  ;;  %v644_v2 = vrot.slane %v643_v30, 2  ;;  %v651_v17 = vrot.slane %v650_v48, 2 }
  0xb1   : > { %3170 = vst [vmem:[#allocation24_spill] sm:$0xff] %v2836_v32  ;;  %v657_v42 = vadd.f32 %v656_v59, %v655_v27  ;;  %v2839_v25 = vmul.f32 0.25, %v738_v37  ;;  %v964_v16 = vsel %vm927_vm3, %v2836_v32, %v963_v62  ;;  %v663_v31 = vrot.slane %v662_v26, 4 }
  0xb2   : > { %v631_v35 = vadd.f32 %v630_v39, %v629_v54  ;;  %v1020_v18 = vsel %vm346_vm0, %v964_v16, 0.0  ;;  %v638_v8 = vadd.f32 %v637_v51, %v636_v61  ;;  %v645_v52 = vadd.f32 %v644_v2, %v643_v30  ;;  %v247_v16 = vld [vmem:[%s2548_s22 + $0xe8] sm:$0xff] }
  0xb3   : > { %3171 = vst [vmem:[#allocation25_spill] sm:$0xff] %v2839_v25  ;;  %v652_v63 = vadd.f32 %v651_v17, %v650_v48  ;;  %v967_v13 = vsel %vm927_vm3, %v2839_v25, %v966_v10  ;;  %v658_v22 = vrot.slane %v657_v42, 2  ;;  %v664_v36 = vadd.f32 %v663_v31, %v662_v26  ;;  %v246_v26 = vld [vmem:[%s2548_s22 + $0xe0] sm:$0xff] }
  0xb4   : > { %v632_v40 = vrot.slane %v631_v35, 1  ;;  %v1021_v49 = vsel %vm346_vm0, %v967_v13, 0.0  ;;  %v639_v37 = vrot.slane %v638_v8, 1  ;;  %v646_v27 = vrot.slane %v645_v52, 1  ;;  %v248_v13 = vld [vmem:[%s2548_s22 + $0xf0] sm:$0xff] }
  0xb5   : > { %v653_v62 = vrot.slane %v652_v63, 1  ;;  %v1022_v7 = vadd.f32 %v1021_v49, %v1020_v18  ;;  %v659_v54 = vadd.f32 %v658_v22, %v657_v42  ;;  %v665_v59 = vrot.slane %v664_v36, 2 }
  0xb6   : > { %v633_v14 = vadd.f32 %v632_v40, %v631_v35  ;;  %v640_v51 = vadd.f32 %v639_v37, %v638_v8  ;;  %v647_v2 = vadd.f32 %v646_v27, %v645_v52  ;;  %v669_v48 = vsel %vm346_vm0, %v2809_v41, 0.0  ;;  %v2862_v40 = vld [vmem:[%s2548_s22 + $0xf8] sm:$0xff]  ;;  %s2123_s22 = scalar_lea.sflag [#allocation4], %s2544_s13 }
  0xb7   : > { %v654_v17 = vadd.f32 %v653_v62, %v652_v63  ;;  %1023 = vadd.xlane.f32.xlu0 %v1022_v7  ;;  %v660_v61 = vrot.slane %v659_v54, 1  ;;  %v666_v10 = vadd.f32 %v665_v59, %v664_v36  ;;  %v670_v30 = vrot.slane %v669_v48, 4 }
  0xb8   : > { %v676_v39 = vsel %vm346_vm0, %v305_v23, 0.0  ;;  %v2852_v35 = vmul.f32 0.25, %v633_v14  ;;  %v2854_v42 = vmul.f32 0.25, %v640_v51  ;;  %v2856_v18 = vmul.f32 0.25, %v647_v2 }
  0xb9   : > { %v677_v31 = vrot.slane %v676_v39, 4  ;;  %v661_v8 = vadd.f32 %v660_v61, %v659_v54  ;;  %v667_v52 = vrot.slane %v666_v10, 1  ;;  %v671_v41 = vadd.f32 %v670_v30, %v669_v48 }
  0xba   : > { %3172 = vst [vmem:[#allocation26_spill] sm:$0xff] %v2852_v35  ;;  %3173 = vst [vmem:[#allocation27_spill] sm:$0xff] %v2854_v42  ;;  %v2858_v63 = vmul.f32 0.25, %v654_v17  ;;  %v956_v23 = vsel %vm923_vm1, %v2856_v18, %v2852_v35  ;;  %v310_v36 = vcombine.high %v246_v26, %v246_v26  ;;  %v311_v49 = vcombine.high %v247_v16, %v247_v16 }
  0xbb   : > { %3174 = vst [vmem:[#allocation28_spill] sm:$0xff] %v2856_v18  ;;  %v678_v22 = vadd.f32 %v677_v31, %v676_v39  ;;  %v668_v37 = vadd.f32 %v667_v52, %v666_v10  ;;  %v672_v27 = vrot.slane %v671_v41, 2  ;;  %v2867_v62 = vmul.f32 0.25, %v661_v8 }
  0xbc   : > { %3175 = vst [vmem:[#allocation29_spill] sm:$0xff] %v2858_v63  ;;  %v959_v7 = vsel %vm923_vm1, %v2858_v63, %v2854_v42  ;;  %v312_v54 = vcombine.high %v248_v13, %v248_v13  ;;  %v313_v59 = vcombine.high %v2862_v40, %v2862_v40  ;;  %v739_v51 = vsel %vm346_vm0, %v246_v26, 0.0 }
  0xbd   : > { %3176 = vst [vmem:[#allocation30_spill] sm:$0xff] %v2867_v62  ;;  %v679_v14 = vrot.slane %v678_v22, 2  ;;  %v673_v2 = vadd.f32 %v672_v27, %v671_v41  ;;  %v2875_v17 = vmul.f32 0.25, %v668_v37  ;;  %v957_v48 = vsel %vm925_vm2, %v2867_v62, %v956_v23 }
  0xbe   : > { %v740_v61 = vrot.slane %v739_v51, 4  ;;  %v746_v30 = vsel %vm346_vm0, %v310_v36, 0.0  ;;  %v753_v39 = vsel %vm346_vm0, %v247_v16, 0.0  ;;  %v760_v31 = vsel %vm346_vm0, %v311_v49, 0.0 }
  0xbf   : > { %3177 = vst [vmem:[#allocation31_spill] sm:$0xff] %v2875_v17  ;;  %v680_v10 = vadd.f32 %v679_v14, %v678_v22  ;;  %v674_v8 = vrot.slane %v673_v2, 1  ;;  %v960_v52 = vsel %vm925_vm2, %v2875_v17, %v959_v7  ;;  %v747_v26 = vrot.slane %v746_v30, 4 }
  0xc0   : > { %v741_v18 = vadd.f32 %v740_v61, %v739_v51  ;;  %v754_v37 = vrot.slane %v753_v39, 4  ;;  %v761_v27 = vrot.slane %v760_v31, 4  ;;  %v767_v63 = vsel %vm346_vm0, %v248_v13, 0.0 }
  0xc1   : > { %v681_v41 = vrot.slane %v680_v10, 1  ;;  %v675_v23 = vadd.f32 %v674_v8, %v673_v2  ;;  %v748_v22 = vadd.f32 %v747_v26, %v746_v30  ;;  %v768_v14 = vrot.slane %v767_v63, 4 }
  0xc2   : > { %v742_v62 = vrot.slane %v741_v18, 2  ;;  %v755_v35 = vadd.f32 %v754_v37, %v753_v39  ;;  %v762_v16 = vadd.f32 %v761_v27, %v760_v31  ;;  %v774_v49 = vsel %vm346_vm0, %v312_v54, 0.0 }
  0xc3   : > { %v682_v36 = vadd.f32 %v681_v41, %v680_v10  ;;  %v2886_v42 = vmul.f32 0.25, %v675_v23  ;;  %v749_v7 = vrot.slane %v748_v22, 2  ;;  %v769_v51 = vadd.f32 %v768_v14, %v767_v63 }
  0xc4   : > { %v743_v32 = vadd.f32 %v742_v62, %v741_v18  ;;  %v756_v17 = vrot.slane %v755_v35, 2  ;;  %v763_v25 = vrot.slane %v762_v16, 2  ;;  %v775_v3 = vrot.slane %v774_v49, 4 }
  0xc5   : > { %v2888_v61 = vmul.f32 0.25, %v682_v36  ;;  %v958_v13 = vsel %vm927_vm3, %v2886_v42, %v957_v48  ;;  %v750_v30 = vadd.f32 %v749_v7, %v748_v22  ;;  %v770_v10 = vrot.slane %v769_v51, 2 }
  0xc6   : > { %v744_v2 = vrot.slane %v743_v32, 1  ;;  %v1015_v54 = vsel %vm346_vm0, %v958_v13, 0.0  ;;  %v757_v31 = vadd.f32 %v756_v17, %v755_v35  ;;  %v764_v18 = vadd.f32 %v763_v25, %v762_v16 }
  0xc7   : > { %v961_v39 = vsel %vm927_vm3, %v2888_v61, %v960_v52  ;;  %v751_v62 = vrot.slane %v750_v30, 1  ;;  %v771_v8 = vadd.f32 %v770_v10, %v769_v51  ;;  %v776_v27 = vadd.f32 %v775_v3, %v774_v49 }
  0xc8   : > { %v1016_v63 = vsel %vm346_vm0, %v961_v39, 0.0  ;;  %v758_v41 = vrot.slane %v757_v31, 1  ;;  %v765_v37 = vrot.slane %v764_v18, 1  ;;  %v781_v48 = vsel %vm346_vm0, %v2862_v40, 0.0 }
  0xc9   : > { %v1017_v26 = vadd.f32 %v1016_v63, %v1015_v54  ;;  %v772_v23 = vrot.slane %v771_v8, 1  ;;  %v788_v22 = vsel %vm346_vm0, %v313_v59, 0.0  ;;  %v745_v52 = vadd.f32 %v744_v2, %v743_v32 }
  0xca   : > { %v759_v14 = vadd.f32 %v758_v41, %v757_v31  ;;  %v777_v36 = vrot.slane %v776_v27, 2  ;;  %v782_v35 = vrot.slane %v781_v48, 4  ;;  %v752_v25 = vadd.f32 %v751_v62, %v750_v30 }
  0xcb   : > { %1018 = vadd.xlane.f32.xlu1 %v1017_v26  ;;  %v766_v17 = vadd.f32 %v765_v37, %v764_v18  ;;  %v789_v16 = vrot.slane %v788_v22, 4  ;;  %v773_v13 = vadd.f32 %v772_v23, %v771_v8  ;;  %v2899_v49 = vmul.f32 0.25, %v745_v52 }
  0xcc   : > { %v778_v7 = vadd.f32 %v777_v36, %v776_v27  ;;  %v783_v51 = vadd.f32 %v782_v35, %v781_v48  ;;  %v2901_v54 = vmul.f32 0.25, %v759_v14  ;;  %v2903_v59 = vmul.f32 0.25, %v752_v25 }
  0xcd   : > { %v790_v10 = vadd.f32 %v789_v16, %v788_v22  ;;  %v2905_v32 = vmul.f32 0.25, %v766_v17  ;;  %v2907_v18 = vmul.f32 0.25, %v773_v13  ;;  %vm1911_vm4 = vcmask 27648  }
  0xce   : > { %v779_v39 = vrot.slane %v778_v7, 1  ;;  %v784_v3 = vrot.slane %v783_v51, 2  ;;  %v968_v8 = vsel %vm923_vm1, %v2901_v54, %v2899_v49  ;;  %vm2041_vm5 = vcmask 31744  }
  0xcf   : > { %v791_v40 = vrot.slane %v790_v10, 2  ;;  %v971_v41 = vsel %vm923_vm1, %v2905_v32, %v2903_v59  ;;  %v969_v23 = vsel %vm925_vm2, %v2907_v18, %v968_v8  ;;  %vm2420_vm6 = vmmov 0  }
  0xd0   : > { %v780_v2 = vadd.f32 %v779_v39, %v778_v7  ;;  %v785_v31 = vadd.f32 %v784_v3, %v783_v51  ;;  %vm2033_vm7 = vcmask 1044484   ;;  %vm2035_vm8 = vcmask 1045509  }
  0xd1   : > { %v792_v30 = vadd.f32 %v791_v40, %v790_v10  ;;  %vm2037_vm9 = vcmask 1046534   ;;  %vm2039_vm10 = vcmask 1047559   ;;  %vm2120_vm11 = vcmask 130048  }
  0xd2   : > { %v786_v63 = vrot.slane %v785_v31, 1  ;;  %v2909_v62 = vmul.f32 0.25, %v780_v2 }
  0xd3   : > { %v793_v26 = vrot.slane %v792_v30, 1 }
  0xd4   : > { %v787_v37 = vadd.f32 %v786_v63, %v785_v31  ;;  %v972_v22 = vsel %vm925_vm2, %v2909_v62, %v971_v41 }
  0xd5   : > { %v794_v27 = vadd.f32 %v793_v26, %v792_v30 }
  0xd6   : > { %v2919_v48 = vmul.f32 0.25, %v787_v37 }
  0xd7   : > { %v2923_v52 = vmul.f32 0.25, %v794_v27 }
  0xd8   : > { %v970_v14 = vsel %vm927_vm3, %v2919_v48, %v969_v23 }
  0xd9   : > { %v973_v36 = vsel %vm927_vm3, %v2923_v52, %v972_v22  ;;  %v1025_v35 = vsel %vm346_vm0, %v970_v14, 0.0 }
  0xda   : > { %v1026_v25 = vsel %vm346_vm0, %v973_v36, 0.0 }
  0xdb   : > { %v1027_v17 = vadd.f32 %v1026_v25, %v1025_v35 }
  0xdd   : > { %v1004_v16 = vpop.xlane.xlu1 %1003  ;;  %1028 = vadd.xlane.f32.xlu1 %v1027_v17 }
  0xde   : > { %v1032_v7 = vmul.f32 0.00390625, %v1004_v16 }
  0xe0   : > { %v1052_v51 = vrot.slane %v1032_v7, 1  ;;  %v1053_v13 = vrot.slane %v1032_v7, 2  ;;  %v1054_v10 = vrot.slane %v1032_v7, 3  ;;  %v1119_v39 = vsub.f32 %v2575_v4, %v1032_v7 }
  0xe1   : > { %v1118_v3 = vsub.f32 %v2567_v60, %v1032_v7 }
  0xe2   : > { %v1121_v40 = vsub.f32 %v2577_v5, %v1052_v51  ;;  %v1123_v2 = vsub.f32 %v2580_v9, %v1053_v13  ;;  %v1125_v31 = vsub.f32 %v2599_v24, %v1054_v10  ;;  %v1120_v30 = vsub.f32 %v2570_v0, %v1052_v51 }
  0xe3   : > { %v1122_v63 = vsub.f32 %v2572_v1, %v1053_v13  ;;  %v1124_v8 = vsub.f32 %v2585_v12, %v1054_v10 }
  0xe4   : > { %v1364_v26 = vrot.slane %v1121_v40, 7  ;;  %v1366_v41 = vrot.slane %v1123_v2, 6  ;;  %v1368_v37 = vrot.slane %v1125_v31, 5  ;;  %v1358_v27 = vrot.slane %v1120_v30, 7 }
  0xe5   : > { %v1360_v23 = vrot.slane %v1122_v63, 6  ;;  %v1362_v4 = vrot.slane %v1124_v8, 5 }
  0xe6   : > { %v1365_v60 = vsel %vm923_vm1, %v1364_v26, %v1119_v39  ;;  %v1359_v5 = vsel %vm923_vm1, %v1358_v27, %v1118_v3 }
  0xe7   : > { %v1367_v9 = vsel %vm925_vm2, %v1366_v41, %v1365_v60  ;;  %v1361_v24 = vsel %vm925_vm2, %v1360_v23, %v1359_v5 }
  0xe8   : > { %v1369_v0 = vsel %vm927_vm3, %v1368_v37, %v1367_v9  ;;  %v1363_v1 = vsel %vm927_vm3, %v1362_v4, %v1361_v24 }
  0xe9   : > { %1402 = vmatprep.subr.mxu0 %v1369_v0  ;;  %1436 = vmatprep.mubr.f32.mxu0 %v1369_v0 }
  0xea   : > { %1403 = vmatpush1.xpose.msra.mxu0 %v1363_v1 }
  0xed   : > { %1437 = vmatmul.mubr.f32.vlgmr.msra.gmra.mxu0 %v1363_v1 }
  0xf2   : > { %v994_v12 = vpop.xlane.xlu0 %993 }
  0xf3   : > { %v1030_v22 = vmul.f32 0.00390625, %v994_v12 }
  0xf5   : > { %v1046_v14 = vrot.slane %v1030_v22, 1  ;;  %v1047_v36 = vrot.slane %v1030_v22, 2  ;;  %v1048_v35 = vrot.slane %v1030_v22, 3  ;;  %v1103_v51 = vsub.f32 %v2614_v19, %v1030_v22 }
  0xf6   : > { %v1102_v40 = vsub.f32 %v2611_v15, %v1030_v22 }
  0xf7   : > { %v1105_v25 = vsub.f32 %v2620_v29, %v1046_v14  ;;  %v1107_v17 = vsub.f32 %v2627_v34, %v1047_v36  ;;  %v1109_v16 = vsub.f32 %v2646_v56, %v1048_v35  ;;  %v1104_v7 = vsub.f32 %v2616_v20, %v1046_v14 }
  0xf8   : > { %v1106_v13 = vsub.f32 %v2625_v33, %v1047_v36  ;;  %v1108_v10 = vsub.f32 %v2637_v44, %v1048_v35 }
  0xf9   : > { %v1180_v39 = vrot.slane %v1105_v25, 7  ;;  %v1182_v3 = vrot.slane %v1107_v17, 6  ;;  %v1174_v2 = vrot.slane %v1104_v7, 7  ;;  %v1184_v30 = vrot.slane %v1109_v16, 5 }
  0xfa   : > { %v1176_v31 = vrot.slane %v1106_v13, 6  ;;  %v1178_v56 = vrot.slane %v1108_v10, 5 }
  0xfb   : > { %v1181_v29 = vsel %vm923_vm1, %v1180_v39, %v1103_v51  ;;  %v1175_v34 = vsel %vm923_vm1, %v1174_v2, %v1102_v40 }
  0xfc   : > { %v1183_v20 = vsel %vm925_vm2, %v1182_v3, %v1181_v29  ;;  %v1177_v19 = vsel %vm925_vm2, %v1176_v31, %v1175_v34  ;;  %v3178_v3 = vld [vmem:[#allocation9_spill] sm:$0xff]  ;;  %v3179_v29 = vld [vmem:[#allocation8_spill] sm:$0xff] }
  0xfd   : > { %v1185_v33 = vsel %vm927_vm3, %v1184_v30, %v1183_v20  ;;  %v1179_v44 = vsel %vm927_vm3, %v1178_v56, %v1177_v19 }
  0xfe   : > { %1218 = vmatprep.subr.mxu1 %v1185_v33  ;;  %1252 = vmatprep.mubr.f32.mxu1 %v1185_v33 }
  0xff   : > { %1219 = vmatpush1.xpose.msra.mxu1 %v1179_v44 }
 0x102   : > { %1253 = vmatmul.mubr.f32.vlgmr.msra.gmra.mxu1 %v1179_v44 }
 0x105   : > { %v999_v15 = vpop.xlane.xlu0 %998 }
 0x106   : > { %v1031_v63 = vmul.f32 0.00390625, %v999_v15 }
 0x108   : > { %v1049_v8 = vrot.slane %v1031_v63, 1  ;;  %v1050_v26 = vrot.slane %v1031_v63, 2  ;;  %v1051_v41 = vrot.slane %v1031_v63, 3  ;;  %v1111_v60 = vsub.f32 %v2659_v38, %v1031_v63 }
 0x109   : > { %v1110_v1 = vsub.f32 %v2655_v43, %v1031_v63 }
 0x10a   : > { %v1113_v37 = vsub.f32 %v2663_v58, %v1049_v8  ;;  %v1115_v27 = vsub.f32 %v2676_v11, %v1050_v26  ;;  %v1117_v23 = vsub.f32 %v2693_v45, %v1051_v41  ;;  %v1112_v4 = vsub.f32 %v2661_v57, %v1049_v8 }
 0x10b   : > { %v1114_v5 = vsub.f32 %v2668_v6, %v1050_v26  ;;  %v1116_v9 = vsub.f32 %v2687_v28, %v1051_v41  ;;  %v3180_v26 = vld [vmem:[#allocation11_spill] sm:$0xff] }
 0x10c   : > { %v1272_v24 = vrot.slane %v1113_v37, 7  ;;  %v1274_v0 = vrot.slane %v1115_v27, 6  ;;  %v1266_v12 = vrot.slane %v1112_v4, 7  ;;  %v1276_v14 = vrot.slane %v1117_v23, 5  ;;  %v3181_v37 = vld [vmem:[#allocation10_spill] sm:$0xff]  ;;  %v3182_v23 = vld [vmem:[#allocation13_spill] sm:$0xff] }
 0x10d   : > { %v1268_v22 = vrot.slane %v1114_v5, 6  ;;  %v1270_v45 = vrot.slane %v1116_v9, 5  ;;  %v3184_v9 = vld [vmem:[#allocation17_spill] sm:$0xff] }
 0x10e   : > { %v1273_v58 = vsel %vm923_vm1, %v1272_v24, %v1111_v60  ;;  %v1267_v11 = vsel %vm923_vm1, %v1266_v12, %v1110_v1  ;;  %v3183_v60 = vld [vmem:[#allocation15_spill] sm:$0xff]  ;;  %v3186_v12 = vld [vmem:[#allocation14_spill] sm:$0xff] }
 0x10f   : > { %v1275_v57 = vsel %vm925_vm2, %v1274_v0, %v1273_v58  ;;  %v1269_v38 = vsel %vm925_vm2, %v1268_v22, %v1267_v11  ;;  %v3185_v0 = vld [vmem:[#allocation12_spill] sm:$0xff] }
 0x110   : > { %v1277_v6 = vsel %vm927_vm3, %v1276_v14, %v1275_v57  ;;  %v1271_v28 = vsel %vm927_vm3, %v1270_v45, %v1269_v38  ;;  %v3187_v58 = vld [vmem:[#allocation16_spill] sm:$0xff] }
 0x111   : > { %1310 = vmatprep.subr.mxu1 %v1277_v6  ;;  %1344 = vmatprep.mubr.f32.mxu1 %v1277_v6 }
 0x112   : > { %1311 = vmatpush1.xpose.msra.mxu1 %v1271_v28 }
 0x115   : > { %1345 = vmatmul.mubr.f32.vlgmr.msra.gmra.mxu1 %v1271_v28 }
 0x11a   : > { %v1014_v43 = vpop.xlane.xlu0 %1013 }
 0x11b   : > { %v1034_v36 = vmul.f32 0.00390625, %v1014_v43 }
 0x11d   : > { %v1058_v35 = vrot.slane %v1034_v36, 1  ;;  %v1059_v25 = vrot.slane %v1034_v36, 2  ;;  %v1060_v17 = vrot.slane %v1034_v36, 3  ;;  %v1135_v10 = vsub.f32 %v2708_v46, %v1034_v36 }
 0x11e   : > { %v1134_v30 = vsub.f32 %v3179_v29, %v1034_v36  ;;  %v3190_v29 = vld [vmem:[#allocation25_spill] sm:$0xff] }
 0x11f   : > { %v1137_v16 = vsub.f32 %v2712_v53, %v1058_v35  ;;  %v1139_v7 = vsub.f32 %v2731_v21, %v1059_v25  ;;  %v1141_v51 = vsub.f32 %v2741_v55, %v1060_v17  ;;  %v1136_v13 = vsub.f32 %v2710_v47, %v1058_v35 }
 0x120   : > { %v1138_v39 = vsub.f32 %v2717_v50, %v1059_v25  ;;  %v1140_v40 = vsub.f32 %v3178_v3, %v1060_v17  ;;  %v3188_v3 = vld [vmem:[#allocation21_spill] sm:$0xff] }
 0x121   : > { %v1548_v2 = vrot.slane %v1137_v16, 7  ;;  %v1550_v31 = vrot.slane %v1139_v7, 6  ;;  %v1542_v34 = vrot.slane %v1136_v13, 7  ;;  %v1552_v20 = vrot.slane %v1141_v51, 5 }
 0x122   : > { %v1544_v56 = vrot.slane %v1138_v39, 6  ;;  %v1546_v55 = vrot.slane %v1140_v40, 5 }
 0x123   : > { %v1549_v53 = vsel %vm923_vm1, %v1548_v2, %v1135_v10  ;;  %v1543_v21 = vsel %vm923_vm1, %v1542_v34, %v1134_v30  ;;  %v3189_v2 = vld [vmem:[#allocation23_spill] sm:$0xff]  ;;  %v3191_v34 = vld [vmem:[#allocation20_spill] sm:$0xff] }
 0x124   : > { %v1551_v47 = vsel %vm925_vm2, %v1550_v31, %v1549_v53  ;;  %v1545_v46 = vsel %vm925_vm2, %v1544_v56, %v1543_v21  ;;  %v3192_v53 = vld [vmem:[#allocation19_spill] sm:$0xff]  ;;  %v3193_v21 = vld [vmem:[#allocation22_spill] sm:$0xff] }
 0x125   : > { %v1553_v50 = vsel %vm927_vm3, %v1552_v20, %v1551_v47  ;;  %v1547_v19 = vsel %vm927_vm3, %v1546_v55, %v1545_v46  ;;  %v3194_v47 = vld [vmem:[#allocation24_spill] sm:$0xff] }
 0x126   : > { %1586 = vmatprep.subr.mxu0 %v1553_v50  ;;  %1620 = vmatprep.mubr.f32.mxu0 %v1553_v50 }
 0x127   : > { %1587 = vmatpush1.xpose.msra.mxu0 %v1547_v19 }
 0x12a   : > { %1621 = vmatmul.mubr.f32.vlgmr.msra.gmra.mxu0 %v1547_v19 }
 0x12c   : > { %v1009_v33 = vpop.xlane.xlu1 %1008 }
 0x12d   : > { %v1033_v44 = vmul.f32 0.00390625, %v1009_v33  ;;  %v3195_v33 = vld [vmem:[#allocation18_spill] sm:$0xff] }
 0x12f   : > { %v1055_v15 = vrot.slane %v1033_v44, 1  ;;  %v1056_v63 = vrot.slane %v1033_v44, 2  ;;  %v1057_v8 = vrot.slane %v1033_v44, 3  ;;  %v1127_v41 = vsub.f32 %v3180_v26, %v1033_v44 }
 0x130   : > { %v1126_v27 = vsub.f32 %v3181_v37, %v1033_v44 }
 0x131   : > { %v1129_v4 = vsub.f32 %v3182_v23, %v1055_v15  ;;  %v1131_v5 = vsub.f32 %v3183_v60, %v1056_v63  ;;  %v1133_v24 = vsub.f32 %v3184_v9, %v1057_v8  ;;  %v1128_v1 = vsub.f32 %v3185_v0, %v1055_v15 }
 0x132   : > { %v1130_v22 = vsub.f32 %v3186_v12, %v1056_v63  ;;  %v1132_v14 = vsub.f32 %v3187_v58, %v1057_v8  ;;  %v3196_v12 = vld [vmem:[#allocation27_spill] sm:$0xff]  ;;  %v3197_v58 = vld [vmem:[#allocation26_spill] sm:$0xff] }
 0x133   : > { %v1456_v11 = vrot.slane %v1129_v4, 7  ;;  %v1458_v45 = vrot.slane %v1131_v5, 6  ;;  %v1460_v57 = vrot.slane %v1133_v24, 5  ;;  %v1450_v38 = vrot.slane %v1128_v1, 7 }
 0x134   : > { %v1452_v6 = vrot.slane %v1130_v22, 6  ;;  %v1454_v28 = vrot.slane %v1132_v14, 5 }
 0x135   : > { %v1457_v43 = vsel %vm923_vm1, %v1456_v11, %v1127_v41  ;;  %v1451_v36 = vsel %vm923_vm1, %v1450_v38, %v1126_v27  ;;  %v3198_v11 = vld [vmem:[#allocation29_spill] sm:$0xff] }
 0x136   : > { %v1459_v35 = vsel %vm925_vm2, %v1458_v45, %v1457_v43  ;;  %v1453_v25 = vsel %vm925_vm2, %v1452_v6, %v1451_v36  ;;  %v3201_v36 = vld [vmem:[#allocation30_spill] sm:$0xff] }
 0x137   : > { %v1461_v17 = vsel %vm927_vm3, %v1460_v57, %v1459_v35  ;;  %v1455_v16 = vsel %vm927_vm3, %v1454_v28, %v1453_v25  ;;  %v3199_v57 = vld [vmem:[#allocation31_spill] sm:$0xff]  ;;  %v3200_v28 = vld [vmem:[#allocation28_spill] sm:$0xff] }
 0x138   : > { %1494 = vmatprep.subr.mxu1 %v1461_v17  ;;  %1528 = vmatprep.mubr.f32.mxu1 %v1461_v17 }
 0x139   : > { %1495 = vmatpush1.xpose.msra.mxu1 %v1455_v16 }
 0x13c   : > { %1529 = vmatmul.mubr.f32.vlgmr.msra.gmra.mxu1 %v1455_v16 }
 0x140   : > { %v1024_v7 = vpop.xlane.xlu0 %1023 }
 0x141   : > { %v1036_v51 = vmul.f32 0.00390625, %v1024_v7 }
 0x143   : > { %v1064_v13 = vrot.slane %v1036_v51, 1  ;;  %v1065_v10 = vrot.slane %v1036_v51, 2  ;;  %v1066_v39 = vrot.slane %v1036_v51, 3  ;;  %v1151_v20 = vsub.f32 %v3192_v53, %v1036_v51 }
 0x144   : > { %v1150_v44 = vsub.f32 %v3195_v33, %v1036_v51 }
 0x145   : > { %v1153_v40 = vsub.f32 %v3188_v3, %v1064_v13  ;;  %v1155_v31 = vsub.f32 %v3189_v2, %v1065_v10  ;;  %v1157_v30 = vsub.f32 %v3190_v29, %v1066_v39  ;;  %v1152_v56 = vsub.f32 %v3191_v34, %v1064_v13 }
 0x146   : > { %v1154_v55 = vsub.f32 %v3193_v21, %v1065_v10  ;;  %v1156_v46 = vsub.f32 %v3194_v47, %v1066_v39 }
 0x147   : > { %v1732_v50 = vrot.slane %v1153_v40, 7  ;;  %v1734_v19 = vrot.slane %v1155_v31, 6  ;;  %v1726_v15 = vrot.slane %v1152_v56, 7  ;;  %v1736_v26 = vrot.slane %v1157_v30, 5 }
 0x148   : > { %v1728_v63 = vrot.slane %v1154_v55, 6  ;;  %v1730_v37 = vrot.slane %v1156_v46, 5 }
 0x149   : > { %v1733_v8 = vsel %vm923_vm1, %v1732_v50, %v1151_v20  ;;  %v1727_v41 = vsel %vm923_vm1, %v1726_v15, %v1150_v44 }
 0x14a   : > { %v1735_v27 = vsel %vm925_vm2, %v1734_v19, %v1733_v8  ;;  %v1729_v23 = vsel %vm925_vm2, %v1728_v63, %v1727_v41  ;;  %v1902_v41 = vld [vmem:[%s3118_s1] sm:$0xf] }
 0x14b   : > { %v1737_v4 = vsel %vm927_vm3, %v1736_v26, %v1735_v27  ;;  %v1731_v60 = vsel %vm927_vm3, %v1730_v37, %v1729_v23 }
 0x14c   : > { %1770 = vmatprep.subr.mxu0 %v1737_v4  ;;  %1804 = vmatprep.mubr.f32.mxu0 %v1737_v4 }
 0x14d   : > { %1771 = vmatpush1.xpose.msra.mxu0 %v1731_v60 }
 0x150   : > { %1805 = vmatmul.mubr.f32.vlgmr.msra.gmra.mxu0 %v1731_v60 }
 0x154   : > { %v1019_v5 = vpop.xlane.xlu1 %1018 }
 0x155   : > { %v1035_v9 = vmul.f32 0.00390625, %v1019_v5 }
 0x157   : > { %v1061_v24 = vrot.slane %v1035_v9, 1  ;;  %v1062_v0 = vrot.slane %v1035_v9, 2  ;;  %v1063_v1 = vrot.slane %v1035_v9, 3  ;;  %v1143_v22 = vsub.f32 %v3196_v12, %v1035_v9 }
 0x158   : > { %v1142_v14 = vsub.f32 %v3197_v58, %v1035_v9 }
 0x159   : > { %v1145_v45 = vsub.f32 %v3198_v11, %v1061_v24  ;;  %v1147_v38 = vsub.f32 %v3199_v57, %v1062_v0  ;;  %v1149_v6 = vsub.f32 %v2888_v61, %v1063_v1  ;;  %v1144_v43 = vsub.f32 %v3200_v28, %v1061_v24 }
 0x15a   : > { %v1146_v35 = vsub.f32 %v3201_v36, %v1062_v0  ;;  %v1148_v25 = vsub.f32 %v2886_v42, %v1063_v1 }
 0x15b   : > { %v1640_v17 = vrot.slane %v1145_v45, 7  ;;  %v1642_v16 = vrot.slane %v1147_v38, 6  ;;  %v1644_v7 = vrot.slane %v1149_v6, 5  ;;  %v1634_v51 = vrot.slane %v1144_v43, 7 }
 0x15c   : > { %v1636_v13 = vrot.slane %v1146_v35, 6  ;;  %v1638_v10 = vrot.slane %v1148_v25, 5 }
 0x15d   : > { %v1641_v39 = vsel %vm923_vm1, %v1640_v17, %v1143_v22  ;;  %v1635_v3 = vsel %vm923_vm1, %v1634_v51, %v1142_v14 }
 0x15e   : > { %v1643_v40 = vsel %vm925_vm2, %v1642_v16, %v1641_v39  ;;  %v1637_v61 = vsel %vm925_vm2, %v1636_v13, %v1635_v3  ;;  %v2418_v3 = vmov 0  }
 0x15f   : > { %v1645_v2 = vsel %vm927_vm3, %v1644_v7, %v1643_v40  ;;  %v1639_v31 = vsel %vm927_vm3, %v1638_v10, %v1637_v61  ;;  %v2216_v7 = vld [vmem:[%s3119_s2] ss:$0 sm:$0xff]  ;;  %2288 = vset.pattern.permute.xlu0 %v2418_v3  ;;  %2287 = vset.pattern.permute.xlu1 %v2418_v3 }
 0x160   : > { %1678 = vmatprep.subr.mxu1 %v1645_v2  ;;  %1712 = vmatprep.mubr.f32.mxu1 %v1645_v2 }
 0x161   : > { %1679 = vmatpush1.xpose.msra.mxu1 %v1639_v31 }
 0x164   : > { %1713 = vmatmul.mubr.f32.vlgmr.msra.gmra.mxu1 %v1639_v31 }
 0x166   : > { %v1029_v42 = vpop.xlane.xlu1 %1028 }
 0x167   : > { %v1037_v29 = vmul.f32 0.00390625, %v1029_v42 }
 0x169   : > { %v1067_v30 = vrot.slane %v1037_v29, 1  ;;  %v1068_v34 = vrot.slane %v1037_v29, 2  ;;  %v1069_v56 = vrot.slane %v1037_v29, 3  ;;  %v1159_v53 = vsub.f32 %v2903_v59, %v1037_v29 }
 0x16a   : > { %v1158_v20 = vsub.f32 %v2899_v49, %v1037_v29 }
 0x16b   : > { %v1161_v21 = vsub.f32 %v2905_v32, %v1067_v30  ;;  %v1163_v55 = vsub.f32 %v2909_v62, %v1068_v34  ;;  %v1165_v47 = vsub.f32 %v2923_v52, %v1069_v56  ;;  %v1160_v46 = vsub.f32 %v2901_v54, %v1067_v30 }
 0x16c   : > { %v1162_v50 = vsub.f32 %v2907_v18, %v1068_v34  ;;  %v1164_v19 = vsub.f32 %v2919_v48, %v1069_v56 }
 0x16d   : > { %v1824_v33 = vrot.slane %v1161_v21, 7  ;;  %v1826_v44 = vrot.slane %v1163_v55, 6  ;;  %v1828_v15 = vrot.slane %v1165_v47, 5  ;;  %v1818_v63 = vrot.slane %v1160_v46, 7 }
 0x16e   : > { %v1820_v8 = vrot.slane %v1162_v50, 6  ;;  %v1822_v59 = vrot.slane %v1164_v19, 5 }
 0x16f   : > { %v1825_v49 = vsel %vm923_vm1, %v1824_v33, %v1159_v53  ;;  %v1819_v32 = vsel %vm923_vm1, %v1818_v63, %v1158_v20 }
 0x170   : > { %v1827_v62 = vsel %vm925_vm2, %v1826_v44, %v1825_v49  ;;  %v1821_v52 = vsel %vm925_vm2, %v1820_v8, %v1819_v32  ;;  %v2419_v8 = vmov 0.0   ;;  %v1963_v49 = vld [vmem:[%s3120_s3 + $0x8] sm:$0xff] }
 0x171   : > { %v1829_v54 = vsel %vm927_vm3, %v1828_v15, %v1827_v62  ;;  %v1823_v18 = vsel %vm927_vm3, %v1822_v59, %v1821_v52  ;;  %2229 = vmatprep.subr.mxu0 %v2419_v8  ;;  %2233 = vmatprep.mubr.msk.f32.mxu0 %vm2420_vm6, %v2419_v8 }
 0x172   : > { %1862 = vmatprep.subr.mxu1 %v1829_v54  ;;  %1896 = vmatprep.mubr.f32.mxu1 %v1829_v54  ;;  %v1962_v54 = vld [vmem:[%s3120_s3] sm:$0xff] }
 0x173   : > { %1863 = vmatpush1.xpose.msra.mxu1 %v1823_v18  ;;  %2230 = vmatpush3.xpose.msk.msra.mxu0 %vm2041_vm5, %v1963_v49 }
 0x174   : > { %2231 = vmatprep.subr.mxu0 %v2419_v8 }
 0x176   : > { %1897 = vmatmul.mubr.f32.vlgmr.msra.gmra.mxu1 %v1823_v18 }
 0x177   : > { %2232 = vmatpush3.xpose.msk.msra.mxu0 %vm2041_vm5, %v1962_v54 }
 0x1ad   : > { %v1438_v48 = vpop.f32.mrf.mxu0 }
 0x1ae   : > { %v1905_v4 = vmul.f32 %v1902_v41, %v1438_v48 }
 0x1af   : > { %v1440_v26 = vpop.f32.mrf.mxu0 }
 0x1b0   : > { %v1918_v5 = vsel %vm1911_vm4, %v1905_v4, 0.0  ;;  %v1996_v26 = vlaneseq }
 0x1c2   : > { %v1254_v37 = vpop.f32.mrf.mxu1 }
 0x1c3   : > { %v1903_v27 = vmul.f32 %v1902_v41, %v1254_v37  ;;  %v1999_v37 = vshrl.u32 %v1996_v26, 7 }
 0x1c4   : > { %v1256_v23 = vpop.f32.mrf.mxu1 }
 0x1c5   : > { %v1912_v60 = vsel %vm1911_vm4, %v1903_v27, 0.0 }
 0x1c6   : > { %1913 = vadd.xlane.f32.xlu0 %v1912_v60 }
 0x1ca   : > { %1919 = vadd.xlane.f32.xlu0 %v1918_v5 }
 0x1d5   : > { %v1346_v9 = vpop.f32.mrf.mxu1 }
 0x1d6   : > { %v1904_v24 = vmul.f32 %v1902_v41, %v1346_v9 }
 0x1d7   : > { %v1348_v0 = vpop.f32.mrf.mxu1 }
 0x1d8   : > { %v1915_v1 = vsel %vm1911_vm4, %v1904_v24, 0.0 }
 0x1d9   : > { %1916 = vadd.xlane.f32.xlu1 %v1915_v1 }
 0x1ea   : > { %v1622_v12 = vpop.f32.mrf.mxu0 }
 0x1eb   : > { %v1907_v22 = vmul.f32 %v1902_v41, %v1622_v12 }
 0x1ec   : > { %v1624_v58 = vpop.f32.mrf.mxu0 }
 0x1ed   : > { %v1924_v14 = vsel %vm1911_vm4, %v1907_v22, 0.0 }
 0x1ee   : > { %1925 = vadd.xlane.f32.xlu0 %v1924_v14 }
 0x1fc   : > { %v1530_v11 = vpop.f32.mrf.mxu1 }
 0x1fd   : > { %v1906_v45 = vmul.f32 %v1902_v41, %v1530_v11 }
 0x1fe   : > { %v1532_v57 = vpop.f32.mrf.mxu1 }
 0x1ff   : > { %v1921_v38 = vsel %vm1911_vm4, %v1906_v45, 0.0 }
 0x200   : > { %1922 = vadd.xlane.f32.xlu1 %v1921_v38 }
 0x210   : > { %v1806_v6 = vpop.f32.mrf.mxu0 }
 0x211   : > { %v1909_v28 = vmul.f32 %v1902_v41, %v1806_v6 }
 0x212   : > { %v1808_v43 = vpop.f32.mrf.mxu0 }
 0x213   : > { %v1930_v36 = vsel %vm1911_vm4, %v1909_v28, 0.0 }
 0x214   : > { %1931 = vadd.xlane.f32.xlu0 %v1930_v36 }
 0x224   : > { %v1714_v35 = vpop.f32.mrf.mxu1 }
 0x225   : > { %v1908_v25 = vmul.f32 %v1902_v41, %v1714_v35 }
 0x226   : > { %v1716_v17 = vpop.f32.mrf.mxu1 }
 0x227   : > { %v1927_v16 = vsel %vm1911_vm4, %v1908_v25, 0.0 }
 0x228   : > { %1928 = vadd.xlane.f32.xlu1 %v1927_v16 }
 0x22a   : > { %1943 = vbcast.lane.b32.xlu0 %v2216_v7, 256 }
 0x236   : > { %v1898_v51 = vpop.f32.mrf.mxu1 }
 0x237   : > { %v1910_v13 = vmul.f32 %v1902_v41, %v1898_v51  ;;  %v1997_v41 = vand.u32 127, %v1996_v26 }
 0x238   : > { %v1900_v10 = vpop.f32.mrf.mxu1 }
 0x239   : > { %v1933_v39 = vsel %vm1911_vm4, %v1910_v13, 0.0  ;;  %v2000_v23 = vsub.s32 %v1997_v41, %v1999_v37 }
 0x23a   : > { %1934 = vadd.xlane.f32.xlu1 %v1933_v39 }
 0x24f   : > { %v1914_v40 = vpop.xlane.xlu0 %1913 }
 0x253   : > { %v1920_v61 = vpop.xlane.xlu0 %1919 }
 0x262   : > { %v1917_v31 = vpop.xlane.xlu1 %1916 }
 0x277   : > { %v1926_v2 = vpop.xlane.xlu0 %1925 }
 0x289   : > { %v1923_v29 = vpop.xlane.xlu1 %1922 }
 0x29d   : > { %v1932_v42 = vpop.xlane.xlu0 %1931 }
 0x2a1   : > { %v1944_v30 = vpop.permute.xlu0 %1943 }
 0x2a2   : > { %v1949_v34 = vadd.f32 %v1944_v30, %v1923_v29  ;;  %v1946_v56 = vadd.f32 %v1944_v30, %v1914_v40  ;;  %v1952_v21 = vadd.f32 %v1944_v30, %v1932_v42  ;;  %v1948_v55 = vadd.f32 %v1944_v30, %v1920_v61 }
 0x2a3   : > { %v1947_v50 = vadd.f32 %v1944_v30, %v1917_v31  ;;  %v1950_v33 = vadd.f32 %v1944_v30, %v1926_v2 }
 0x2a4   : > { %v1957_v53 = vmax.f32 %v1949_v34, 0.0  ;;  %v1954_v20 = vmax.f32 %v1946_v56, 0.0  ;;  %v1960_v47 = vmax.f32 %v1952_v21, 0.0  ;;  %v1956_v46 = vmax.f32 %v1948_v55, 0.0 }
 0x2a5   : > { %v1955_v19 = vmax.f32 %v1947_v50, 0.0  ;;  %v1958_v15 = vmax.f32 %v1950_v33, 0.0 }
 0x2a6   : > { %1982 = vperm.xlu0 %2288, %v1957_v53   ;;  %1973 = vperm.xlu1 %2287, %v1954_v20  }
 0x2aa   : > { %1991 = vperm.xlu0 %2288, %v1960_v47   ;;  %1979 = vperm.xlu1 %2287, %v1956_v46  }
 0x2ae   : > { %1976 = vperm.xlu1 %2287, %v1955_v19  }
 0x2b1   : > { %v1929_v44 = vpop.xlane.xlu1 %1928 }
 0x2b2   : > { %v1951_v63 = vadd.f32 %v1944_v30, %v1929_v44  ;;  %1985 = vperm.xlu1 %2287, %v1958_v15  }
 0x2b4   : > { %v1959_v59 = vmax.f32 %v1951_v63, 0.0 }
 0x2b6   : > { %1988 = vperm.xlu1 %2287, %v1959_v59  }
 0x2c3   : > { %v1935_v32 = vpop.xlane.xlu1 %1934 }
 0x2c4   : > { %v1953_v62 = vadd.f32 %v1944_v30, %v1935_v32 }
 0x2c6   : > { %v1961_v52 = vmax.f32 %v1953_v62, 0.0 }
 0x2c8   : > { %1994 = vperm.xlu1 %2287, %v1961_v52  }
 0x321   : > { %v1974_v18 = vpop.permute.xlu1 %1973  ;;  %v1983_v24 = vpop.permute.xlu0 %1982 }
 0x322   : > { %v2001_v5 = vrot.slane %v1974_v18, %v2000_v23  ;;  %v2013_v22 = vrot.slane %v1983_v24, %v2000_v23 }
 0x325   : > { %v1980_v48 = vpop.permute.xlu1 %1979  ;;  %v1992_v45 = vpop.permute.xlu0 %1991 }
 0x326   : > { %v2009_v0 = vrot.slane %v1980_v48, %v2000_v23  ;;  %v2025_v6 = vrot.slane %v1992_v45, %v2000_v23 }
 0x329   : > { %v1977_v27 = vpop.permute.xlu1 %1976 }
 0x32a   : > { %v2005_v4 = vrot.slane %v1977_v27, %v2000_v23 }
 0x32c   : > { %v2030_v9 = vsel %vm923_vm1, %v2005_v4, %v2001_v5 }
 0x32d   : > { %v1986_v60 = vpop.permute.xlu1 %1985  ;;  %v2031_v1 = vsel %vm925_vm2, %v2009_v0, %v2030_v9 }
 0x32e   : > { %v2017_v58 = vrot.slane %v1986_v60, %v2000_v23  ;;  %v2032_v14 = vsel %vm927_vm3, %v2013_v22, %v2031_v1 }
 0x330   : > { %v2034_v57 = vsel %vm2033_vm7, %v2017_v58, %v2032_v14 }
 0x331   : > { %v1989_v12 = vpop.permute.xlu1 %1988 }
 0x332   : > { %v2021_v11 = vrot.slane %v1989_v12, %v2000_v23 }
 0x334   : > { %v2036_v38 = vsel %vm2035_vm8, %v2021_v11, %v2034_v57 }
 0x335   : > { %v2038_v36 = vsel %vm2037_vm9, %v2025_v6, %v2036_v38 }
 0x343   : > { %v1995_v28 = vpop.permute.xlu1 %1994 }
 0x344   : > { %v2029_v43 = vrot.slane %v1995_v28, %v2000_v23 }
 0x346   : > { %v2040_v35 = vsel %vm2039_vm10, %v2029_v43, %v2038_v36 }
 0x347   : > { %2234 = vmatmul.mubr.msk.f32.vlgmr.msra.gmra.mxu0 %vm2041_vm5, %v2040_v35 }
 0x407   : > { %v2116_v25 = vpop.f32.mrf.mxu0 }
 0x408   : > { %2121 = vst.msk [vmem:[%s216_s6] sm:$0xff] %vm2120_vm11, %v2116_v25 }
 0x409   : > { %v2235_v17 = vpop.f32.mrf.mxu0 }
 0x40a   : > { %2362 = shalt.err (!%p2359_p10)
}
 0x40b   : > { %s2363_s11 = scalar_lea.hbm %s3074_s20, 128  ;;  %s2367_s23 = scalar_lea.hbm %s3121_s4, 256 }
 0x40c   : > { %p2364_p0 = scmp.ne.s32.totalorder %s3074_s20, %s2363_s11  ;;  %p2368_p1 = scmp.lt.s32.totalorder %s3074_s20, %s3121_s4 }
 0x40d   : > { %p2369_p3 = scmp.lt.s32.totalorder %s2367_s23, %s2363_s11 }
 0x40e   : > { %p2365_p2 = pnand %p2364_p0, %p3202_p12 }
 0x40f   : > { %p2370_p6 = por %p2369_p3, %p2368_p1 }
 0x410   : > { %p2366_p9 = pneg %p2365_p2 }
 0x412   : > { %p2371_p11 = pnand %p2370_p6, %p2366_p9 }
 0x414   : > { %2374 = shalt.err (!%p2371_p11)
}
 0x415   : > { %2238 = dma.vmem_to_hbm [thread:$0]  (%p3202_p12), %s3076_s7, 128, %s3074_s20, %s2123_s22  }
 0x416 PF: > { %s2148_s30 = sand.u32 1, %s2401_s15   ;;  %p3203_p13 = scmp.ne.s32.totalorder %s3151_s28, 0 }
 0x417   : > { %p3204_p4 = scmp.ge.s32.totalorder %s2413_s18, 2  ;;  %s2149_s5 = scalar_lea.sflag [#allocation4], %s2148_s30 }
 0x419   : > { %p2245_p5 = pnand %p3204_p4, %p3203_p13 }
 0x41b   : > { %p2246_p7 = pneg %p2245_p5 }
 0x41d   : > { %2396 = dma.done.wait (%p2246_p7), %s2149_s5, 128  }
 0x41e   : > { %2398 = vsyncadd (%p2246_p7), %s2149_s5, 4294967168  ;;  %p17_p8 = scmp.ge.s32.totalorder %s2472_s21, 4   ;;  %s3205_s15 = smov %s2405_s16 }
 0x41f   : > { %s3206_s16 = smov %s2409_s17  ;;  %s3207_s17 = smov %s2484_s24 }
 0x420   : > { %s3208_s18 = smov %s2472_s21  ;;  %19 = sbr.rel (!%p17_p8) target bundleno = 5 (0x5), region = 81 }
 0x425   :  { %2154 = vsyncpa [#allocation3], 1 }
 0x426   :  { %2156 = vsyncpa [#allocation3 + $0x1], 1 }
 0x427   :  { %2157 = vsyncpa [#allocation4], 1 }
 0x428   :  { %2159 = vsyncpa [#allocation4 + $0x1], 1 }

</bundles_post_ra>
